<compile_context>
chip_gen: v7x
topology: tpu7x:2x2x1
jax: 0.10.0
libtpu: 0.0.40
codegen_flags: <defaults>
</compile_context>

<pallas_src>
import jax
import jax.numpy as jnp
from jax import lax
from jax.experimental import pallas as pl
from jax.experimental.pallas import tpu as pltpu

EXPANSION = 4
BN_EPS = 1e-5
LANE = 128   # channel dims are padded to multiples of the TPU lane width
LPAD = 8     # sublane-aligned left/right zero-pad columns of the conv1 scratch


def _round_up(x, m):
    return (x + m - 1) // m * m


# ---------------------------------------------------------------------------
# Fused Bottleneck kernel (one grid step = one (batch, row-tile) pair).
#   xc_ref : (1, TH, W, CinP)      bf16  row tile of x (conv1 input + residual)
#   xt_ref : (1, 1,  W, CinP)      bf16  row above the tile (masked at t == 0)
#   xb_ref : (1, 1,  W, CinP)      bf16  row below the tile (masked at t == last)
#   w1_ref : (CinP, PP)            bf16  conv1 weight, BN1 scale folded in
#   b1_ref : (1, PP)               f32
#   w2_ref : (3, 3*PP, PP)         bf16  conv2 weight, kw taps concatenated on K
#   b2_ref : (1, PP)               f32
#   w3_ref : (PP, CoutP)           bf16  conv3 weight, BN3 scale folded in
#   b3_ref : (1, CoutP)            f32
#   o_ref  : (1, TH, W, CoutP)     bf16  output row tile
#   t1_ref : (TH+2, W+2*LPAD, PP)  f32   scratch: conv1 output (+ halo, + W pad)
# ---------------------------------------------------------------------------
def _bottleneck_kernel(xc_ref, xt_ref, xb_ref, w1_ref, b1_ref, w2_ref, b2_ref,
                       w3_ref, b3_ref, o_ref, t1_ref):
    _, TH, W, CinP = xc_ref.shape
    CoutP = o_ref.shape[-1]
    PP = w1_ref.shape[-1]
    Wp = W + 2 * LPAD
    t = pl.program_id(1)
    n_t = pl.num_programs(1)

    # ---- conv1 (1x1) + bn1 + relu on the tile rows and both halo rows ------
    # The scratch persists across (parallel) grid steps, so everything it
    # provides this step must be rewritten this step: zero the pad columns,
    # then write the TH+2 conv1 rows.
    zero_pad = jnp.zeros((TH + 2, LPAD, PP), t1_ref.dtype)
    t1_ref[:, 0:LPAD, :] = zero_pad
    t1_ref[:, LPAD + W:, :] = zero_pad

    x_all = jnp.concatenate(
        [xc_ref[0].reshape(TH * W, CinP),
         xt_ref[0].reshape(W, CinP),
         xb_ref[0].reshape(W, CinP)], axis=0)              # (TH*W + 2W, CinP)
    y1 = jnp.dot(x_all, w1_ref[...], preferred_element_type=jnp.float32)
    y1 = jnp.maximum(y1 + b1_ref[...], 0.0)

    t1_ref[1:1 + TH, LPAD:LPAD + W, :] = y1[:TH * W].reshape(TH, W, PP)
    y_top = y1[TH * W:TH * W + W].reshape(1, W, PP)
    y_bot = y1[TH * W + W:].reshape(1, W, PP)
    # Halo rows outside the image are the 3x3 conv's zero padding.
    t1_ref[0:1, LPAD:LPAD + W, :] = jnp.where(t > 0, y_top, 0.0)
    t1_ref[TH + 1:TH + 2, LPAD:LPAD + W, :] = jnp.where(t < n_t - 1, y_bot, 0.0)

    # ---- conv2 (3x3, stride 1, pad 1) + bn2 + relu --------------------------
    # One K = 3*PP dot per kh (kw taps concatenated along K); the kw shifts are
    # XLU rolls into the zero-pad columns followed by 8-aligned slices, and the
    # result is accumulated as a local value (single store at the end).
    acc = None
    for kh in range(3):
        slab = t1_ref[kh:kh + TH, :, :]                    # (TH, Wp, PP) f32
        p_m = pltpu.roll(slab, shift=1, axis=1)            # col c-1 -> col c
        p_p = pltpu.roll(slab, shift=Wp - 1, axis=1)       # col c+1 -> col c
        patch = jnp.concatenate(
            [p_m[:, LPAD:LPAD + W, :],                     # kw = 0
             slab[:, LPAD:LPAD + W, :],                    # kw = 1
             p_p[:, LPAD:LPAD + W, :]], axis=-1)           # kw = 2
        patch = patch.astype(w2_ref.dtype).reshape(TH * W, 3 * PP)
        contrib = jnp.dot(patch, w2_ref[kh],
                          preferred_element_type=jnp.float32)
        acc = contrib if acc is None else acc + contrib
    y2 = jnp.maximum(acc + b2_ref[...], 0.0).astype(w3_ref.dtype)

    # ---- conv3 (1x1) + bn3 + identity residual + relu -----------------------
    res = xc_ref[0].reshape(TH * W, CinP).astype(jnp.float32)
    y3 = jnp.dot(y2, w3_ref[...], preferred_element_type=jnp.float32)
    y3 = jnp.maximum(y3 + b3_ref[...] + res, 0.0)
    o_ref[...] = y3.reshape(1, TH, W, CoutP).astype(o_ref.dtype)


# ---------------------------------------------------------------------------
# Parameter setup / BN folding (plain JAX glue).
# ---------------------------------------------------------------------------
def fold_bn(gamma, beta, mean, var, eps=BN_EPS):
    scale = gamma / jnp.sqrt(var + eps)
    bias = beta - mean * scale
    return scale, bias


def _pad_to(a, shape):
    pads = [(0, s - d) for d, s in zip(a.shape, shape)]
    if all(p == (0, 0) for p in pads):
        return a
    return jnp.pad(a, pads)


def _pick_tile_h(h, w, pp, cin_p, cout_p):
    """Largest row tile dividing H that fits a conservative VMEM budget."""
    budget = 24 * 1024 * 1024                      # v7x-safe (64 MiB physical)
    for th in (32, 16, 8):
        if h % th:
            continue
        need = (2 * th * w * cin_p * 2             # x row tile (bf16, 2 buffers)
                + 2 * th * w * cout_p * 2          # out row tile (bf16, 2 buffers)
                + (th + 2) * (w + 2 * LPAD) * pp * 4   # conv1 halo scratch (f32)
                + 4 * th * w * 3 * pp * 4)         # conv2 patch/acc temporaries
        if need <= budget:
            return th
    return 8 if h % 8 == 0 else h


def init_params(key, inplanes, planes):
    ks = jax.random.split(key, 16)
    p = {}
    # conv1: 1x1, inplanes -> planes   (stored as (Cin, Cout) matmul weight)
    p["w1"] = 0.1 * jax.random.normal(ks[0], (inplanes, planes), jnp.float32)
    # conv2: 3x3, planes -> planes     (stored HWIO)
    p["w2"] = 0.1 * jax.random.normal(ks[1], (3, 3, planes, planes), jnp.float32)
    # conv3: 1x1, planes -> planes*4
    p["w3"] = 0.1 * jax.random.normal(
        ks[2], (planes, planes * EXPANSION), jnp.float32)

    def bn(kg, kb, km, kv, c):
        gamma = 0.5 + jax.random.uniform(kg, (c,), jnp.float32)
        beta = 0.1 * jax.random.normal(kb, (c,), jnp.float32)
        mean = 0.1 * jax.random.normal(km, (c,), jnp.float32)
        var = 0.5 + jax.random.uniform(kv, (c,), jnp.float32)
        return gamma, beta, mean, var

    p["bn1"] = bn(ks[3], ks[4], ks[5], ks[6], planes)
    p["bn2"] = bn(ks[7], ks[8], ks[9], ks[10], planes)
    p["bn3"] = bn(ks[11], ks[12], ks[13], ks[14], planes * EXPANSION)
    return p


# ---------------------------------------------------------------------------
# Fused Bottleneck forward, NHWC-native (recommended boundary).
# ---------------------------------------------------------------------------
@jax.jit
def bottleneck_forward_nhwc(x_nhwc, params):
    """x: (N, H, W, Cin) any float dtype -> (N, H, W, Cout) bf16."""
    n, h, w, cin = x_nhwc.shape
    planes = params["w1"].shape[1]
    cout = planes * EXPANSION
    assert cin == cout, "identity residual requires inplanes == planes*4"
    assert w % 8 == 0, "W must be a multiple of 8 (sublane) for this kernel"

    s1, b1 = fold_bn(*params["bn1"])
    s2, b2 = fold_bn(*params["bn2"])
    s3, b3 = fold_bn(*params["bn3"])

    # Fold BN scales into the conv weights (one-time constant fold).
    w1 = params["w1"] * s1[None, :]
    w2 = params["w2"] * s2[None, None, None, :]
    w3 = params["w3"] * s3[None, :]

    cin_p = _round_up(cin, LANE)
    pp = _round_up(planes, LANE)
    cout_p = _round_up(cout, LANE)
    assert cin_p == cout_p  # needed for the in-kernel identity residual

    # Lane-dense, bf16 MXU inputs.
    x_p = _pad_to(x_nhwc, (n, h, w, cin_p)).astype(jnp.bfloat16)

    w1_p = _pad_to(w1, (cin_p, pp)).astype(jnp.bfloat16)
    # conv2 HWIO -> (kh, kw*PP, PP): the 3 kw taps become one K = 3*PP matmul.
    w2_p = _pad_to(w2, (3, 3, pp, pp)).astype(jnp.bfloat16).reshape(3, 3 * pp, pp)
    w3_p = _pad_to(w3, (pp, cout_p)).astype(jnp.bfloat16)
    b1_p = _pad_to(b1[None, :], (1, pp)).astype(jnp.float32)
    b2_p = _pad_to(b2[None, :], (1, pp)).astype(jnp.float32)
    b3_p = _pad_to(b3[None, :], (1, cout_p)).astype(jnp.float32)

    th = _pick_tile_h(h, w, pp, cin_p, cout_p)
    t_tiles = h // th

    out_p = pl.pallas_call(
        _bottleneck_kernel,
        out_shape=jax.ShapeDtypeStruct((n, h, w, cout_p), jnp.bfloat16),
        grid=(n, t_tiles),
        in_specs=[
            # row tile of x (conv1 input + residual)
            pl.BlockSpec((1, th, w, cin_p), lambda b, t: (b, t, 0, 0)),
            # single halo row above / below the tile.  Block size 1 along H, so
            # the block index is the row index; the wrapped index at the image
            # boundary fetches a valid row whose contribution is masked to zero
            # inside the kernel (3x3 zero padding).
            pl.BlockSpec((1, 1, w, cin_p),
                         lambda b, t: (b, (t * th + h - 1) % h, 0, 0)),
            pl.BlockSpec((1, 1, w, cin_p),
                         lambda b, t: (b, (t * th + th) % h, 0, 0)),
            pl.BlockSpec((cin_p, pp), lambda b, t: (0, 0)),
            pl.BlockSpec((1, pp), lambda b, t: (0, 0)),
            pl.BlockSpec((3, 3 * pp, pp), lambda b, t: (0, 0, 0)),
            pl.BlockSpec((1, pp), lambda b, t: (0, 0)),
            pl.BlockSpec((pp, cout_p), lambda b, t: (0, 0)),
            pl.BlockSpec((1, cout_p), lambda b, t: (0, 0)),
        ],
        out_specs=pl.BlockSpec((1, th, w, cout_p), lambda b, t: (b, t, 0, 0)),
        scratch_shapes=[
            pltpu.VMEM((th + 2, w + 2 * LPAD, pp), jnp.float32),  # conv1 + halo
        ],
        compiler_params=pltpu.CompilerParams(
            dimension_semantics=("parallel", "parallel"),
            vmem_limit_bytes=48 * 1024 * 1024),
    )(x_p, x_p, x_p, w1_p, b1_p, w2_p, b2_p, w3_p, b3_p)

    return out_p[..., :cout]


# ---------------------------------------------------------------------------
# Thin NCHW wrapper for drop-in parity with the PyTorch module boundary.
# ---------------------------------------------------------------------------
@jax.jit
def bottleneck_forward(x_nchw, params):
    x_nhwc = jnp.transpose(x_nchw, (0, 2, 3, 1))
    out = bottleneck_forward_nhwc(x_nhwc, params)
    return jnp.transpose(out, (0, 3, 1, 2)).astype(x_nchw.dtype)


# ---------------------------------------------------------------------------
# Pure-JAX f32 reference (verification only).
# ---------------------------------------------------------------------------
def bottleneck_reference(x_nchw, params):
    x = jnp.transpose(x_nchw, (0, 2, 3, 1))  # NHWC
    s1, b1 = fold_bn(*params["bn1"])
    s2, b2 = fold_bn(*params["bn2"])
    s3, b3 = fold_bn(*params["bn3"])

    def conv1x1(y, wm):
        return jnp.einsum("nhwc,cd->nhwd", y, wm)

    out = jnp.maximum(conv1x1(x, params["w1"]) * s1 + b1, 0.0)
    out = lax.conv_general_dilated(
        out, params["w2"], window_strides=(1, 1), padding=((1, 1), (1, 1)),
        dimension_numbers=("NHWC", "HWIO", "NHWC"))
    out = jnp.maximum(out * s2 + b2, 0.0)
    out = conv1x1(out, params["w3"]) * s3 + b3
    out = jnp.maximum(out + x, 0.0)
    return jnp.transpose(out, (0, 3, 1, 2))


if __name__ == "__main__":
    # Small shapes consistent with the module: planes=4 -> out channels 16,
    # so inplanes=16 allows the identity residual.  NCHW input (module parity).
    batch, planes, spatial = 2, 4, 16
    inplanes = planes * EXPANSION  # 16

    key = jax.random.PRNGKey(0)
    kx, kp = jax.random.split(key)
    x = jax.random.normal(kx, (batch, inplanes, spatial, spatial), jnp.float32)
    params = init_params(kp, inplanes, planes)

    y = bottleneck_forward(x, params)
    y = jax.block_until_ready(y)

    y_ref = bottleneck_reference(x, params)
    assert y.shape == (batch, inplanes, spatial, spatial)
    max_err = float(jnp.max(jnp.abs(y - y_ref)))
    # bf16 MXU inputs + bf16 kernel output -> looser tolerance than pure f32.
    assert jnp.allclose(y, y_ref, atol=6e-2, rtol=6e-2), (
        "mismatch vs reference, max abs err = %g" % max_err)

    print("KERNEL_OK")
</pallas_src>

<mosaic_0001>
module attributes {stable_mosaic.version = 11 : i64} {
  func.func @_bottleneck_kernel(%arg0: i32, %arg1: i32, %arg2: memref<1x16x16x128xbf16, #tpu.memory_space<vmem>>, %arg3: memref<1x1x16x128xbf16, #tpu.memory_space<vmem>>, %arg4: memref<1x1x16x128xbf16, #tpu.memory_space<vmem>>, %arg5: memref<128x128xbf16, #tpu.memory_space<vmem>>, %arg6: memref<1x128xf32, #tpu.memory_space<vmem>>, %arg7: memref<3x384x128xbf16, #tpu.memory_space<vmem>>, %arg8: memref<1x128xf32, #tpu.memory_space<vmem>>, %arg9: memref<128x128xbf16, #tpu.memory_space<vmem>>, %arg10: memref<1x128xf32, #tpu.memory_space<vmem>>, %arg11: memref<1x16x16x128xbf16, #tpu.memory_space<vmem>>, %arg12: memref<18x32x128xf32, #tpu.memory_space<vmem>>) attributes {dimension_semantics = [#tpu.dimension_semantics<parallel>, #tpu.dimension_semantics<parallel>], iteration_bounds = array<i64: 2, 1>, scalar_prefetch = 0 : i64, scratch_operands = 1 : i64, tpu.core_type = #tpu.core_type<tc>, window_params = [{transform_indices = @transform_0, window_bounds = array<i64: 1, 16, 16, 128>}, {transform_indices = @transform_1, window_bounds = array<i64: 1, 1, 16, 128>}, {transform_indices = @transform_2, window_bounds = array<i64: 1, 1, 16, 128>}, {pipeline_mode = #tpu.pipeline_mode<synchronous>, transform_indices = @transform_3, window_bounds = array<i64: 128, 128>}, {pipeline_mode = #tpu.pipeline_mode<synchronous>, transform_indices = @transform_4, window_bounds = array<i64: 1, 128>}, {pipeline_mode = #tpu.pipeline_mode<synchronous>, transform_indices = @transform_5, window_bounds = array<i64: 3, 384, 128>}, {pipeline_mode = #tpu.pipeline_mode<synchronous>, transform_indices = @transform_6, window_bounds = array<i64: 1, 128>}, {pipeline_mode = #tpu.pipeline_mode<synchronous>, transform_indices = @transform_7, window_bounds = array<i64: 128, 128>}, {pipeline_mode = #tpu.pipeline_mode<synchronous>, transform_indices = @transform_8, window_bounds = array<i64: 1, 128>}, {transform_indices = @transform_9, window_bounds = array<i64: 1, 16, 16, 128>}]} {
    %cst = arith.constant 0.000000e+00 : f32
    %0 = vector.broadcast %cst : f32 to vector<18x8x128xf32>
    %c0 = arith.constant 0 : index
    %c0_0 = arith.constant 0 : index
    %c0_1 = arith.constant 0 : index
    %1 = vector.load %arg12[%c0, %c0_0, %c0_1] : memref<18x32x128xf32, #tpu.memory_space<vmem>>, vector<18x8x128xf32>
    tpu.vector_store %arg12[%c0, %c0_0, %c0_1], %0 {strides = array<i32>} : memref<18x32x128xf32, #tpu.memory_space<vmem>>, vector<18x8x128xf32>,
    %c0_2 = arith.constant 0 : index
    %c24 = arith.constant 24 : index
    %c0_3 = arith.constant 0 : index
    %2 = vector.load %arg12[%c0_2, %c24, %c0_3] : memref<18x32x128xf32, #tpu.memory_space<vmem>>, vector<18x8x128xf32>
    tpu.vector_store %arg12[%c0_2, %c24, %c0_3], %0 {strides = array<i32>} : memref<18x32x128xf32, #tpu.memory_space<vmem>>, vector<18x8x128xf32>,
    %c0_4 = arith.constant 0 : index
    %c0_5 = arith.constant 0 : index
    %c0_6 = arith.constant 0 : index
    %c0_7 = arith.constant 0 : index
    %3 = vector.load %arg2[%c0_4, %c0_5, %c0_6, %c0_7] : memref<1x16x16x128xbf16, #tpu.memory_space<vmem>>, vector<1x16x16x128xbf16>
    %4 = vector.shape_cast %3 : vector<1x16x16x128xbf16> to vector<16x16x128xbf16>
    %5 = vector.shape_cast %4 : vector<16x16x128xbf16> to vector<256x128xbf16>
    %c0_8 = arith.constant 0 : index
    %c0_9 = arith.constant 0 : index
    %c0_10 = arith.constant 0 : index
    %c0_11 = arith.constant 0 : index
    %6 = vector.load %arg3[%c0_8, %c0_9, %c0_10, %c0_11] : memref<1x1x16x128xbf16, #tpu.memory_space<vmem>>, vector<1x1x16x128xbf16>
    %7 = vector.shape_cast %6 : vector<1x1x16x128xbf16> to vector<1x16x128xbf16>
    %8 = vector.shape_cast %7 : vector<1x16x128xbf16> to vector<16x128xbf16>
    %c0_12 = arith.constant 0 : index
    %c0_13 = arith.constant 0 : index
    %c0_14 = arith.constant 0 : index
    %c0_15 = arith.constant 0 : index
    %9 = vector.load %arg4[%c0_12, %c0_13, %c0_14, %c0_15] : memref<1x1x16x128xbf16, #tpu.memory_space<vmem>>, vector<1x1x16x128xbf16>
    %10 = vector.shape_cast %9 : vector<1x1x16x128xbf16> to vector<1x16x128xbf16>
    %11 = vector.shape_cast %10 : vector<1x16x128xbf16> to vector<16x128xbf16>
    %12 = tpu.concatenate %5, %8, %11 in 0 : vector<256x128xbf16>, vector<16x128xbf16>, vector<16x128xbf16> -> vector<288x128xbf16>
    %c0_16 = arith.constant 0 : index
    %c0_17 = arith.constant 0 : index
    %13 = vector.load %arg5[%c0_16, %c0_17] : memref<128x128xbf16, #tpu.memory_space<vmem>>, vector<128x128xbf16>
    %cst_18 = arith.constant dense<0.000000e+00> : vector<288x128xf32>
    %14 = tpu.matmul %12, %13, %cst_18 {dimension_numbers = #tpu.dot_dimension_numbers<[1], [0], [0], [1], [0, 0, 1, 1], [], []>} : vector<288x128xbf16>, vector<128x128xbf16>, vector<288x128xf32> -> vector<288x128xf32>
    %c0_19 = arith.constant 0 : index
    %c0_20 = arith.constant 0 : index
    %15 = vector.load %arg6[%c0_19, %c0_20] : memref<1x128xf32, #tpu.memory_space<vmem>>, vector<1x128xf32>
    %16 = vector.broadcast %15 : vector<1x128xf32> to vector<288x128xf32>
    %17 = arith.addf %14, %16 : vector<288x128xf32>
    %cst_21 = arith.constant 0.000000e+00 : f32
    %18 = vector.broadcast %cst_21 : f32 to vector<288x128xf32>
    %19 = arith.maximumf %17, %18 : vector<288x128xf32>
    %20 = vector.extract_strided_slice %19 {offsets = [0, 0], sizes = [256, 128], strides = [1, 1]} : vector<288x128xf32> to vector<256x128xf32>
    %21 = vector.shape_cast %20 : vector<256x128xf32> to vector<16x16x128xf32>
    %c1 = arith.constant 1 : index
    %c8 = arith.constant 8 : index
    %c0_22 = arith.constant 0 : index
    %22 = vector.load %arg12[%c1, %c8, %c0_22] : memref<18x32x128xf32, #tpu.memory_space<vmem>>, vector<16x16x128xf32>
    tpu.vector_store %arg12[%c1, %c8, %c0_22], %21 {strides = array<i32>} : memref<18x32x128xf32, #tpu.memory_space<vmem>>, vector<16x16x128xf32>,
    %23 = vector.extract_strided_slice %19 {offsets = [256, 0], sizes = [16, 128], strides = [1, 1]} : vector<288x128xf32> to vector<16x128xf32>
    %24 = vector.shape_cast %23 : vector<16x128xf32> to vector<1x16x128xf32>
    %25 = vector.extract_strided_slice %19 {offsets = [272, 0], sizes = [16, 128], strides = [1, 1]} : vector<288x128xf32> to vector<16x128xf32>
    %26 = vector.shape_cast %25 : vector<16x128xf32> to vector<1x16x128xf32>
    %c0_i32 = arith.constant 0 : i32
    %27 = arith.cmpi sgt, %arg1, %c0_i32 : i32
    %cst_23 = arith.constant 0.000000e+00 : f32
    %28 = vector.broadcast %cst_23 : f32 to vector<1x16x128xf32>
    %29 = arith.select %27, %24, %28 : vector<1x16x128xf32>
    %c0_24 = arith.constant 0 : index
    %c8_25 = arith.constant 8 : index
    %c0_26 = arith.constant 0 : index
    %30 = vector.load %arg12[%c0_24, %c8_25, %c0_26] : memref<18x32x128xf32, #tpu.memory_space<vmem>>, vector<1x16x128xf32>
    tpu.vector_store %arg12[%c0_24, %c8_25, %c0_26], %29 {strides = array<i32>} : memref<18x32x128xf32, #tpu.memory_space<vmem>>, vector<1x16x128xf32>,
    %c0_i32_27 = arith.constant 0 : i32
    %31 = arith.cmpi slt, %arg1, %c0_i32_27 : i32
    %cst_28 = arith.constant 0.000000e+00 : f32
    %32 = vector.broadcast %cst_28 : f32 to vector<1x16x128xf32>
    %33 = arith.select %31, %26, %32 : vector<1x16x128xf32>
    %c17 = arith.constant 17 : index
    %c8_29 = arith.constant 8 : index
    %c0_30 = arith.constant 0 : index
    %34 = vector.load %arg12[%c17, %c8_29, %c0_30] : memref<18x32x128xf32, #tpu.memory_space<vmem>>, vector<1x16x128xf32>
    tpu.vector_store %arg12[%c17, %c8_29, %c0_30], %33 {strides = array<i32>} : memref<18x32x128xf32, #tpu.memory_space<vmem>>, vector<1x16x128xf32>,
    %c0_31 = arith.constant 0 : index
    %c0_32 = arith.constant 0 : index
    %c0_33 = arith.constant 0 : index
    %35 = vector.load %arg12[%c0_31, %c0_32, %c0_33] : memref<18x32x128xf32, #tpu.memory_space<vmem>>, vector<16x32x128xf32>
    %c1_i32 = arith.constant 1 : i32
    %36 = tpu.dynamic_rotate %35 by %c1_i32 dim 1 : vector<16x32x128xf32>, i32 -> vector<16x32x128xf32>
    %c31_i32 = arith.constant 31 : i32
    %37 = tpu.dynamic_rotate %35 by %c31_i32 dim 1 : vector<16x32x128xf32>, i32 -> vector<16x32x128xf32>
    %38 = vector.extract_strided_slice %36 {offsets = [0, 8, 0], sizes = [16, 16, 128], strides = [1, 1, 1]} : vector<16x32x128xf32> to vector<16x16x128xf32>
    %39 = vector.extract_strided_slice %35 {offsets = [0, 8, 0], sizes = [16, 16, 128], strides = [1, 1, 1]} : vector<16x32x128xf32> to vector<16x16x128xf32>
    %40 = vector.extract_strided_slice %37 {offsets = [0, 8, 0], sizes = [16, 16, 128], strides = [1, 1, 1]} : vector<16x32x128xf32> to vector<16x16x128xf32>
    %41 = tpu.concatenate %38, %39, %40 in 2 : vector<16x16x128xf32>, vector<16x16x128xf32>, vector<16x16x128xf32> -> vector<16x16x384xf32>
    %42 = arith.truncf %41 : vector<16x16x384xf32> to vector<16x16x384xbf16>
    %43 = vector.shape_cast %42 : vector<16x16x384xbf16> to vector<256x384xbf16>
    %c0_34 = arith.constant 0 : index
    %c0_35 = arith.constant 0 : index
    %c0_36 = arith.constant 0 : index
    %44 = vector.load %arg7[%c0_34, %c0_35, %c0_36] : memref<3x384x128xbf16, #tpu.memory_space<vmem>>, vector<1x384x128xbf16>
    %45 = vector.shape_cast %44 : vector<1x384x128xbf16> to vector<384x128xbf16>
    %cst_37 = arith.constant dense<0.000000e+00> : vector<256x128xf32>
    %46 = tpu.matmul %43, %45, %cst_37 {dimension_numbers = #tpu.dot_dimension_numbers<[1], [0], [0], [1], [0, 0, 1, 1], [], []>} : vector<256x384xbf16>, vector<384x128xbf16>, vector<256x128xf32> -> vector<256x128xf32>
    %c1_38 = arith.constant 1 : index
    %c0_39 = arith.constant 0 : index
    %c0_40 = arith.constant 0 : index
    %47 = vector.load %arg12[%c1_38, %c0_39, %c0_40] : memref<18x32x128xf32, #tpu.memory_space<vmem>>, vector<16x32x128xf32>
    %c1_i32_41 = arith.constant 1 : i32
    %48 = tpu.dynamic_rotate %47 by %c1_i32_41 dim 1 : vector<16x32x128xf32>, i32 -> vector<16x32x128xf32>
    %c31_i32_42 = arith.constant 31 : i32
    %49 = tpu.dynamic_rotate %47 by %c31_i32_42 dim 1 : vector<16x32x128xf32>, i32 -> vector<16x32x128xf32>
    %50 = vector.extract_strided_slice %48 {offsets = [0, 8, 0], sizes = [16, 16, 128], strides = [1, 1, 1]} : vector<16x32x128xf32> to vector<16x16x128xf32>
    %51 = vector.extract_strided_slice %47 {offsets = [0, 8, 0], sizes = [16, 16, 128], strides = [1, 1, 1]} : vector<16x32x128xf32> to vector<16x16x128xf32>
    %52 = vector.extract_strided_slice %49 {offsets = [0, 8, 0], sizes = [16, 16, 128], strides = [1, 1, 1]} : vector<16x32x128xf32> to vector<16x16x128xf32>
    %53 = tpu.concatenate %50, %51, %52 in 2 : vector<16x16x128xf32>, vector<16x16x128xf32>, vector<16x16x128xf32> -> vector<16x16x384xf32>
    %54 = arith.truncf %53 : vector<16x16x384xf32> to vector<16x16x384xbf16>
    %55 = vector.shape_cast %54 : vector<16x16x384xbf16> to vector<256x384xbf16>
    %c1_43 = arith.constant 1 : index
    %c0_44 = arith.constant 0 : index
    %c0_45 = arith.constant 0 : index
    %56 = vector.load %arg7[%c1_43, %c0_44, %c0_45] : memref<3x384x128xbf16, #tpu.memory_space<vmem>>, vector<1x384x128xbf16>
    %57 = vector.shape_cast %56 : vector<1x384x128xbf16> to vector<384x128xbf16>
    %cst_46 = arith.constant dense<0.000000e+00> : vector<256x128xf32>
    %58 = tpu.matmul %55, %57, %cst_46 {dimension_numbers = #tpu.dot_dimension_numbers<[1], [0], [0], [1], [0, 0, 1, 1], [], []>} : vector<256x384xbf16>, vector<384x128xbf16>, vector<256x128xf32> -> vector<256x128xf32>
    %59 = arith.addf %46, %58 : vector<256x128xf32>
    %c2 = arith.constant 2 : index
    %c0_47 = arith.constant 0 : index
    %c0_48 = arith.constant 0 : index
    %60 = vector.load %arg12[%c2, %c0_47, %c0_48] : memref<18x32x128xf32, #tpu.memory_space<vmem>>, vector<16x32x128xf32>
    %c1_i32_49 = arith.constant 1 : i32
    %61 = tpu.dynamic_rotate %60 by %c1_i32_49 dim 1 : vector<16x32x128xf32>, i32 -> vector<16x32x128xf32>
    %c31_i32_50 = arith.constant 31 : i32
    %62 = tpu.dynamic_rotate %60 by %c31_i32_50 dim 1 : vector<16x32x128xf32>, i32 -> vector<16x32x128xf32>
    %63 = vector.extract_strided_slice %61 {offsets = [0, 8, 0], sizes = [16, 16, 128], strides = [1, 1, 1]} : vector<16x32x128xf32> to vector<16x16x128xf32>
    %64 = vector.extract_strided_slice %60 {offsets = [0, 8, 0], sizes = [16, 16, 128], strides = [1, 1, 1]} : vector<16x32x128xf32> to vector<16x16x128xf32>
    %65 = vector.extract_strided_slice %62 {offsets = [0, 8, 0], sizes = [16, 16, 128], strides = [1, 1, 1]} : vector<16x32x128xf32> to vector<16x16x128xf32>
    %66 = tpu.concatenate %63, %64, %65 in 2 : vector<16x16x128xf32>, vector<16x16x128xf32>, vector<16x16x128xf32> -> vector<16x16x384xf32>
    %67 = arith.truncf %66 : vector<16x16x384xf32> to vector<16x16x384xbf16>
    %68 = vector.shape_cast %67 : vector<16x16x384xbf16> to vector<256x384xbf16>
    %c2_51 = arith.constant 2 : index
    %c0_52 = arith.constant 0 : index
    %c0_53 = arith.constant 0 : index
    %69 = vector.load %arg7[%c2_51, %c0_52, %c0_53] : memref<3x384x128xbf16, #tpu.memory_space<vmem>>, vector<1x384x128xbf16>
    %70 = vector.shape_cast %69 : vector<1x384x128xbf16> to vector<384x128xbf16>
    %cst_54 = arith.constant dense<0.000000e+00> : vector<256x128xf32>
    %71 = tpu.matmul %68, %70, %cst_54 {dimension_numbers = #tpu.dot_dimension_numbers<[1], [0], [0], [1], [0, 0, 1, 1], [], []>} : vector<256x384xbf16>, vector<384x128xbf16>, vector<256x128xf32> -> vector<256x128xf32>
    %72 = arith.addf %59, %71 : vector<256x128xf32>
    %c0_55 = arith.constant 0 : index
    %c0_56 = arith.constant 0 : index
    %73 = vector.load %arg8[%c0_55, %c0_56] : memref<1x128xf32, #tpu.memory_space<vmem>>, vector<1x128xf32>
    %74 = vector.broadcast %73 : vector<1x128xf32> to vector<256x128xf32>
    %75 = arith.addf %72, %74 : vector<256x128xf32>
    %cst_57 = arith.constant 0.000000e+00 : f32
    %76 = vector.broadcast %cst_57 : f32 to vector<256x128xf32>
    %77 = arith.maximumf %75, %76 : vector<256x128xf32>
    %78 = arith.truncf %77 : vector<256x128xf32> to vector<256x128xbf16>
    %c0_58 = arith.constant 0 : index
    %c0_59 = arith.constant 0 : index
    %c0_60 = arith.constant 0 : index
    %c0_61 = arith.constant 0 : index
    %79 = vector.load %arg2[%c0_58, %c0_59, %c0_60, %c0_61] : memref<1x16x16x128xbf16, #tpu.memory_space<vmem>>, vector<1x16x16x128xbf16>
    %80 = vector.shape_cast %79 : vector<1x16x16x128xbf16> to vector<16x16x128xbf16>
    %81 = vector.shape_cast %80 : vector<16x16x128xbf16> to vector<256x128xbf16>
    %82 = arith.extf %81 : vector<256x128xbf16> to vector<256x128xf32>
    %c0_62 = arith.constant 0 : index
    %c0_63 = arith.constant 0 : index
    %83 = vector.load %arg9[%c0_62, %c0_63] : memref<128x128xbf16, #tpu.memory_space<vmem>>, vector<128x128xbf16>
    %cst_64 = arith.constant dense<0.000000e+00> : vector<256x128xf32>
    %84 = tpu.matmul %78, %83, %cst_64 {dimension_numbers = #tpu.dot_dimension_numbers<[1], [0], [0], [1], [0, 0, 1, 1], [], []>} : vector<256x128xbf16>, vector<128x128xbf16>, vector<256x128xf32> -> vector<256x128xf32>
    %c0_65 = arith.constant 0 : index
    %c0_66 = arith.constant 0 : index
    %85 = vector.load %arg10[%c0_65, %c0_66] : memref<1x128xf32, #tpu.memory_space<vmem>>, vector<1x128xf32>
    %86 = vector.broadcast %85 : vector<1x128xf32> to vector<256x128xf32>
    %87 = arith.addf %84, %86 : vector<256x128xf32>
    %88 = arith.addf %87, %82 : vector<256x128xf32>
    %cst_67 = arith.constant 0.000000e+00 : f32
    %89 = vector.broadcast %cst_67 : f32 to vector<256x128xf32>
    %90 = arith.maximumf %88, %89 : vector<256x128xf32>
    %91 = vector.shape_cast %90 : vector<256x128xf32> to vector<1x16x16x128xf32>
    %92 = arith.truncf %91 : vector<1x16x16x128xf32> to vector<1x16x16x128xbf16>
    %c0_68 = arith.constant 0 : index
    %c0_69 = arith.constant 0 : index
    %c0_70 = arith.constant 0 : index
    %c0_71 = arith.constant 0 : index
    %93 = vector.load %arg11[%c0_68, %c0_69, %c0_70, %c0_71] : memref<1x16x16x128xbf16, #tpu.memory_space<vmem>>, vector<1x16x16x128xbf16>
    tpu.vector_store %arg11[%c0_68, %c0_69, %c0_70, %c0_71], %92 {strides = array<i32>} : memref<1x16x16x128xbf16, #tpu.memory_space<vmem>>, vector<1x16x16x128xbf16>,
    return
  }
  func.func @transform_0(%arg0: i32, %arg1: i32) -> (i32, i32, i32, i32) {
    %c0_i32 = arith.constant 0 : i32
    %c0_i32_0 = arith.constant 0 : i32
    %c0_i32_1 = arith.constant 0 : i32
    return %arg0, %arg1, %c0_i32, %c0_i32_0 : i32, i32, i32, i32
  }
  func.func @transform_1(%arg0: i32, %arg1: i32) -> (i32, i32, i32, i32) {
    %c16_i32 = arith.constant 16 : i32
    %0 = arith.muli %arg1, %c16_i32 : i32
    %c16_i32_0 = arith.constant 16 : i32
    %1 = arith.addi %0, %c16_i32_0 : i32
    %c1_i32 = arith.constant 1 : i32
    %2 = arith.subi %1, %c1_i32 : i32
    %c16_i32_1 = arith.constant 16 : i32
    %c0_i32 = arith.constant 0 : i32
    %3 = arith.cmpi eq, %c16_i32_1, %c0_i32 : i32
    %c1_i32_2 = arith.constant 1 : i32
    %4 = arith.select %3, %c1_i32_2, %c16_i32_1 : i32
    %5 = arith.remsi %2, %4 : i32
    %c0_i32_3 = arith.constant 0 : i32
    %6 = arith.cmpi ne, %5, %c0_i32_3 : i32
    %c0_i32_4 = arith.constant 0 : i32
    %7 = arith.cmpi slt, %5, %c0_i32_4 : i32
    %c0_i32_5 = arith.constant 0 : i32
    %8 = arith.cmpi slt, %4, %c0_i32_5 : i32
    %9 = arith.xori %7, %8 : i1
    %10 = arith.andi %9, %6 : i1
    %11 = arith.addi %5, %4 : i32
    %12 = arith.select %10, %11, %5 : i32
    %c0_i32_6 = arith.constant 0 : i32
    %c0_i32_7 = arith.constant 0 : i32
    %c0_i32_8 = arith.constant 0 : i32
    return %arg0, %12, %c0_i32_6, %c0_i32_7 : i32, i32, i32, i32
  }
  func.func @transform_2(%arg0: i32, %arg1: i32) -> (i32, i32, i32, i32) {
    %c16_i32 = arith.constant 16 : i32
    %0 = arith.muli %arg1, %c16_i32 : i32
    %c16_i32_0 = arith.constant 16 : i32
    %1 = arith.addi %0, %c16_i32_0 : i32
    %c16_i32_1 = arith.constant 16 : i32
    %c0_i32 = arith.constant 0 : i32
    %2 = arith.cmpi eq, %c16_i32_1, %c0_i32 : i32
    %c1_i32 = arith.constant 1 : i32
    %3 = arith.select %2, %c1_i32, %c16_i32_1 : i32
    %4 = arith.remsi %1, %3 : i32
    %c0_i32_2 = arith.constant 0 : i32
    %5 = arith.cmpi ne, %4, %c0_i32_2 : i32
    %c0_i32_3 = arith.constant 0 : i32
    %6 = arith.cmpi slt, %4, %c0_i32_3 : i32
    %c0_i32_4 = arith.constant 0 : i32
    %7 = arith.cmpi slt, %3, %c0_i32_4 : i32
    %8 = arith.xori %6, %7 : i1
    %9 = arith.andi %8, %5 : i1
    %10 = arith.addi %4, %3 : i32
    %11 = arith.select %9, %10, %4 : i32
    %c0_i32_5 = arith.constant 0 : i32
    %c0_i32_6 = arith.constant 0 : i32
    %c0_i32_7 = arith.constant 0 : i32
    return %arg0, %11, %c0_i32_5, %c0_i32_6 : i32, i32, i32, i32
  }
  func.func @transform_3(%arg0: i32, %arg1: i32) -> (i32, i32) {
    %c0_i32 = arith.constant 0 : i32
    %c0_i32_0 = arith.constant 0 : i32
    %c0_i32_1 = arith.constant 0 : i32
    return %c0_i32, %c0_i32_0 : i32, i32
  }
  func.func @transform_4(%arg0: i32, %arg1: i32) -> (i32, i32) {
    %c0_i32 = arith.constant 0 : i32
    %c0_i32_0 = arith.constant 0 : i32
    %c0_i32_1 = arith.constant 0 : i32
    return %c0_i32, %c0_i32_0 : i32, i32
  }
  func.func @transform_5(%arg0: i32, %arg1: i32) -> (i32, i32, i32) {
    %c0_i32 = arith.constant 0 : i32
    %c0_i32_0 = arith.constant 0 : i32
    %c0_i32_1 = arith.constant 0 : i32
    %c0_i32_2 = arith.constant 0 : i32
    return %c0_i32, %c0_i32_0, %c0_i32_1 : i32, i32, i32
  }
  func.func @transform_6(%arg0: i32, %arg1: i32) -> (i32, i32) {
    %c0_i32 = arith.constant 0 : i32
    %c0_i32_0 = arith.constant 0 : i32
    %c0_i32_1 = arith.constant 0 : i32
    return %c0_i32, %c0_i32_0 : i32, i32
  }
  func.func @transform_7(%arg0: i32, %arg1: i32) -> (i32, i32) {
    %c0_i32 = arith.constant 0 : i32
    %c0_i32_0 = arith.constant 0 : i32
    %c0_i32_1 = arith.constant 0 : i32
    return %c0_i32, %c0_i32_0 : i32, i32
  }
  func.func @transform_8(%arg0: i32, %arg1: i32) -> (i32, i32) {
    %c0_i32 = arith.constant 0 : i32
    %c0_i32_0 = arith.constant 0 : i32
    %c0_i32_1 = arith.constant 0 : i32
    return %c0_i32, %c0_i32_0 : i32, i32
  }
  func.func @transform_9(%arg0: i32, %arg1: i32) -> (i32, i32, i32, i32) {
    %c0_i32 = arith.constant 0 : i32
    %c0_i32_0 = arith.constant 0 : i32
    %c0_i32_1 = arith.constant 0 : i32
    return %arg0, %arg1, %c0_i32, %c0_i32_0 : i32, i32, i32, i32
  }
}

</mosaic_0001>

<bundles_post_ra>
// kernel: bottleneck_forward_nhwc.1
= control target key start
LH: loop header
LB: loop body
LE: loop exit
PB: predicated region body
PF: predicated region fallthrough
CT: control target
= control target key end

     0   :  { %s7351_s0 = inlined_call_operand.vmem [shape: bf16[2,16,16,128], index: 0, kind: input, shape index: {}, may-alias: {0,1,2}]   ;;  %s7352_s1 = inlined_call_operand.vmem [shape: bf16[2,16,16,128], index: 1, kind: input, shape index: {}, may-alias: {0,1,2}]   ;;  %s7353_s2 = inlined_call_operand.vmem [shape: bf16[2,16,16,128], index: 2, kind: input, shape index: {}, may-alias: {0,1,2}]   ;;  %s7354_s3 = inlined_call_operand.vmem [shape: bf16[128,128], index: 3, kind: input, shape index: {}]   ;;  %s7355_s4 = inlined_call_operand.vmem [shape: f32[1,128], index: 4, kind: input, shape index: {}]   ;;  %s7356_s5 = inlined_call_operand.vmem [shape: bf16[3,384,128], index: 5, kind: input, shape index: {}]   ;;  %s7357_s6 = inlined_call_operand.vmem [shape: f32[1,128], index: 6, kind: input, shape index: {}]   ;;  %s7358_s7 = inlined_call_operand.vmem [shape: bf16[128,128], index: 7, kind: input, shape index: {}]   ;;  %s7359_s8 = inlined_call_operand.vmem [shape: f32[1,128], index: 8, kind: input, shape index: {}]   ;;  %s7360_s9 = inlined_call_operand.hbm [shape: bf16[2,16,16,128], index: 9, kind: output, shape index: {}]  }
   0x1   :  { %7367 = sst [smem:[#allocation9_spill]] %s7351_s0 }
   0x2   :  { %7368 = sst [smem:[#allocation10_spill]] %s7354_s3 }
   0x3   :  { %14 = vsyncpa [#allocation4], 0 }
   0x4   :  { %16 = vsyncpa [#allocation4 + $0x1], 0  ;;  %s5933_s30 = smov 0   ;;  %s5935_s10 = smov 0  }
   0x5   :  { %s5937_s11 = smov 0   ;;  %s5939_s12 = smov 0  }
   0x6   :  { %s5941_s13 = smov 0   ;;  %s5943_s14 = smov 0  }
   0x7 LB: > { %s4289_s15 = sadd.s32 4294967295, %s5876_s14   ;;  %s4290_s16 = sadd.s32 4294967294, %s5876_s14   ;;  %s5876_s14 = sphi %s5943_s14, %s22_s14   ;;  %s5872_s13 = sphi %s5941_s13, %s7416_s13   ;;  %s5868_s12 = sphi %s5939_s12, %s7415_s12   ;;  %s5864_s11 = sphi %s5937_s11, %s7414_s11   ;;  %s5860_s10 = sphi %s5935_s10, %s7413_s10   ;;  %s5856_s30 = sphi %s5933_s30, %s7412_s30  }
   0x8   : > { %s34_s17 = sadd.s32 1, %s5872_s13  ;;  %s309_s18 = sadd.s32 1, %s5864_s11 }
   0x9   : > { %p36_p0 = scmp.ge.s32.totalorder %s34_s17, 2  ;;  %p319_p1 = scmp.ne.s32.totalorder %s5864_s11, %s5860_s10 }
   0xa   : > { %p320_p2 = scmp.eq.s32.totalorder %s4289_s15, 1  ;;  %p325_p3 = scmp.ne.s32.totalorder %s5860_s10, %s5856_s30 }
   0xb   : > { %s7418_s17 = smov (%p36_p0, %s34_s17), 0  ;;  %p326_p5 = scmp.eq.s32.totalorder %s4290_s16, 1 }
   0xc   : > { %p5973_p4 = por %p320_p2, %p319_p1  ;;  %s304_s20 = ssub.s32 %s5872_s13, %s7418_s17 }
   0xd   : > { %p4293_p6 = scmp.ge.s32.totalorder %s5876_s14, 1  ;;  %p307_p7 = scmp.eq.s32.totalorder %s304_s20, 0 }
   0xe   : > { %p5980_p8 = por %p326_p5, %p325_p3  ;;  %p456_p9 = scmp.lt.s32.totalorder %s5876_s14, 3 }
   0xf   : > { %s5986_s22 = scalar_select %p307_p7, %s5864_s11, %s309_s18  }
  0x10   : > { %p457_p10 = pnand %p4293_p6, %p456_p9 }
  0x12   : > { %460 = sbr.rel (%p457_p10) target bundleno = 1064 (0x428), region = 56 }
  0x19   : > { %s7371_s3 = sld [smem:[#allocation10_spill]]  ;;  %p544_p11 = scmp.lt.s32.totalorder %s5868_s12, 1  ;;  %v5716_v10 = vld [vmem:[%s7356_s5 + $0x100] sm:$0xff]   ;;  %v5719_v17 = vld [vmem:[%s7356_s5 + $0x108] sm:$0xff]   ;;  %v5722_v22 = vld [vmem:[%s7356_s5 + $0x110] sm:$0xff]   ;;  %v1256_v52 = vlaneseq  ;;  %v5878_v59 = vmov 0.0  }
  0x1a   : > { %s7372_s0 = sld [smem:[#allocation9_spill]]  ;;  %v5717_v12 = vld [vmem:[%s7356_s5 + $0x140] sm:$0xff]   ;;  %v5720_v18 = vld [vmem:[%s7356_s5 + $0x148] sm:$0xff]   ;;  %v5723_v25 = vld [vmem:[%s7356_s5 + $0x150] sm:$0xff]   ;;  %v6135_v60 = vrot.slane %v5878_v59, 7 }
  0x1b   : > { %s545_s27 = scalar_select %p544_p11, %s5868_s12, 1  ;;  %v5718_v16 = vld [vmem:[%s7356_s5 + $0xc0] sm:$0xff]   ;;  %v5721_v19 = vld [vmem:[%s7356_s5 + $0xc8] sm:$0xff]   ;;  %v5724_v26 = vld [vmem:[%s7356_s5 + $0xd0] sm:$0xff]   ;;  %v6127_v53 = vshrl.u32 %v1256_v52, 7 }
  0x1c   : > { %v5725_v27 = vld [vmem:[%s7356_s5 + $0x118] sm:$0xff]   ;;  %v5728_v30 = vld [vmem:[%s7356_s5 + $0x120] sm:$0xff]   ;;  %v5731_v39 = vld [vmem:[%s7356_s5 + $0x128] sm:$0xff]  }
  0x1d   : > { %s5999_s15 = sshll.u32 %s545_s27, 7  ;;  %v5726_v28 = vld [vmem:[%s7356_s5 + $0x158] sm:$0xff]   ;;  %v5729_v31 = vld [vmem:[%s7356_s5 + $0x160] sm:$0xff]   ;;  %v5732_v40 = vld [vmem:[%s7356_s5 + $0x168] sm:$0xff]   ;;  %vm1258_vm0 = vcmp.lt.s32.totalorder %v6127_v53, 1  ;;  %vm1339_vm1 = vcmp.lt.s32.totalorder %v6127_v53, 7 }
  0x1e   : > { %v5727_v29 = vld [vmem:[%s7356_s5 + $0xd8] sm:$0xff]   ;;  %v5730_v36 = vld [vmem:[%s7356_s5 + $0xe0] sm:$0xff]   ;;  %v5733_v41 = vld [vmem:[%s7356_s5 + $0xe8] sm:$0xff]   ;;  %s4545_s24 = sadd.s32 120, %s5999_s15  ;;  %s613_s28 = scalar_lea.vmem %s7353_s2, %s5999_s15 }
  0x1f   : > { %v5692_v0 = vld [vmem:[%s7371_s3] sm:$0xff]   ;;  %v5693_v1 = vld [vmem:[%s7371_s3 + $0x8] sm:$0xff]   ;;  %v5694_v2 = vld [vmem:[%s7371_s3 + $0x10] sm:$0xff]   ;;  %s540_s27 = sand.u32 1, %s5860_s10  }
  0x20   : > { %5213 = vmatprep.subr.bf16.mxu0 %v5692_v0  ;;  %5457 = vmatprep.subr.bf16.mxu1 %v5692_v0  ;;  %s6005_s20 = scalar_lea.vmem %s7372_s0, %s5999_s15  ;;  %v5695_v3 = vld [vmem:[%s7371_s3 + $0x18] sm:$0xff]   ;;  %v5696_v5 = vld [vmem:[%s7371_s3 + $0x20] sm:$0xff]   ;;  %v5697_v6 = vld [vmem:[%s7371_s3 + $0x28] sm:$0xff]   ;;  %s576_s0 = scalar_lea.vmem %s7352_s1, %s4545_s24 }
  0x21   : > { %5214 = vmatpush3.bf16.msra.mxu0 %v5692_v0  ;;  %5465 = vmatpush3.bf16.msra.mxu1 %v5692_v0  ;;  %v5700_v4 = vld [vmem:[%s6005_s20] sm:$0xff]   ;;  %v5698_v8 = vld [vmem:[%s7371_s3 + $0x30] sm:$0xff]   ;;  %v5699_v9 = vld [vmem:[%s7371_s3 + $0x38] sm:$0xff]  }
  0x22   : > { %5215 = vmatprep.subr.bf16.mxu0 %v5693_v1  ;;  %5458 = vmatprep.subr.bf16.mxu1 %v5693_v1  ;;  %v5708_v7 = vld [vmem:[%s6005_s20 + $0x40] sm:$0xff]   ;;  %v5701_v11 = vld [vmem:[%s6005_s20 + $0x8] sm:$0xff]   ;;  %v5702_v13 = vld [vmem:[%s6005_s20 + $0x10] sm:$0xff]  }
  0x23   : > { %5229 = vmatprep.mubr.bf16.mxu0 %v5700_v4  ;;  %5245 = vmatprep.mubr.bf16.mxu1 %v5708_v7  ;;  %v5709_v14 = vld [vmem:[%s6005_s20 + $0x48] sm:$0xff]   ;;  %v5710_v15 = vld [vmem:[%s6005_s20 + $0x50] sm:$0xff]   ;;  %v5703_v20 = vld [vmem:[%s6005_s20 + $0x18] sm:$0xff]  }
  0x24   : > { %v5711_v21 = vld [vmem:[%s6005_s20 + $0x58] sm:$0xff]   ;;  %v5704_v23 = vld [vmem:[%s6005_s20 + $0x20] sm:$0xff]   ;;  %v5705_v32 = vld [vmem:[%s6005_s20 + $0x28] sm:$0xff]  }
  0x25   : > { %5216 = vmatpush3.bf16.msra.mxu0 %v5693_v1  ;;  %5466 = vmatpush3.bf16.msra.mxu1 %v5693_v1  ;;  %v5712_v24 = vld [vmem:[%s6005_s20 + $0x60] sm:$0xff]   ;;  %v5713_v33 = vld [vmem:[%s6005_s20 + $0x68] sm:$0xff]   ;;  %v5706_v34 = vld [vmem:[%s6005_s20 + $0x30] sm:$0xff]   ;;  %v6140_v1 = vrot.slane %v5878_v59, 1 }
  0x26   : > { %5217 = vmatprep.subr.bf16.mxu0 %v5694_v2  ;;  %5459 = vmatprep.subr.bf16.mxu1 %v5694_v2  ;;  %v5714_v35 = vld [vmem:[%s6005_s20 + $0x70] sm:$0xff]   ;;  %v5707_v37 = vld [vmem:[%s6005_s20 + $0x38] sm:$0xff]   ;;  %v5734_v42 = vld [vmem:[%s576_s0] sm:$0xff]   ;;  %s5880_s0 = smov [#allocation3]  }
  0x27   : > { %v5715_v38 = vld [vmem:[%s6005_s20 + $0x78] sm:$0xff]   ;;  %v5735_v43 = vld [vmem:[%s613_s28] sm:$0xff]   ;;  %v5736_v44 = vld [vmem:[%s7356_s5 + $0x130] sm:$0xff]   ;;  %s4294_s28 = sshll.u32 %s540_s27, 7  ;;  %s5802_s3 = sshll.u32 %s5880_s0, 4  ;;  %s5803_s3 = int_to_ptr.vmem [resolvable:$false] %s5802_s3 }
  0x28   : > { %v5737_v45 = vld [vmem:[%s7356_s5 + $0x170] sm:$0xff]   ;;  %v5739_v47 = vld [vmem:[%s7356_s5 + $0x138] sm:$0xff]   ;;  %v6121_v50 = vld [vmem:[%s7356_s5 + $0x80] sm:$0xff]   ;;  %s7238_s29 = scalar_lea.vmem [#allocation3], %s4294_s28  ;;  %s5804_s15 = scalar_lea.vmem %s5803_s3, 4096 }
  0x29   : > { %5218 = vmatpush3.bf16.msra.mxu0 %v5694_v2  ;;  %5467 = vmatpush3.bf16.msra.mxu1 %v5694_v2  ;;  %v5738_v46 = vld [vmem:[%s7356_s5 + $0xf0] sm:$0xff]   ;;  %v5740_v48 = vld [vmem:[%s7356_s5 + $0x178] sm:$0xff]   ;;  %v5750_v51 = vld [vmem:[%s7356_s5 + $0x40] sm:$0xff]   ;;  %s4165_s16 = sshll.u32 %s7238_s29, 4  ;;  %s7299_s16 = int_to_ptr.vmem [resolvable:$true] %s4165_s16 }
  0x2a   : > { %5219 = vmatprep.subr.bf16.mxu0 %v5695_v3  ;;  %5460 = vmatprep.subr.bf16.mxu1 %v5695_v3  ;;  %v5741_v49 = vld [vmem:[%s7356_s5 + $0xf8] sm:$0xff]   ;;  %v6132_v54 = vld [vmem:[%s7355_s4] ss:$0 sm:$0xff]  ;;  %s5798_s24 = scalar_lea.vmem %s7299_s16, 2048  ;;  %p5805_p1 = scmp.lt.s32.totalorder %s7299_s16, %s5803_s3 }
  0x2b   : > { %v5753_v53 = vld [vmem:[%s7356_s5 + $0x180] sm:$0xff]   ;;  %p5799_p12 = scmp.ne.s32.totalorder %s7299_s16, %s5798_s24  ;;  %p5806_p2 = scmp.lt.s32.totalorder %s5804_s15, %s5798_s24 }
  0x2d   : > { %5220 = vmatpush3.bf16.msra.mxu0 %v5695_v3  ;;  %5468 = vmatpush3.bf16.msra.mxu1 %v5695_v3  ;;  %p5800_p13 = pnand %p5799_p12, %p5973_p4  ;;  %p5807_p3 = por %p5806_p2, %p5805_p1 }
  0x2e   : > { %5221 = vmatprep.subr.bf16.mxu0 %v5696_v5  ;;  %5461 = vmatprep.subr.bf16.mxu1 %v5696_v5 }
  0x2f   : > { %p5801_p0 = pneg %p5800_p13 }
  0x31   : > { %5222 = vmatpush3.bf16.msra.mxu0 %v5696_v5  ;;  %5469 = vmatpush3.bf16.msra.mxu1 %v5696_v5  ;;  %p5808_p5 = pnand %p5807_p3, %p5801_p0 }
  0x32   : > { %5223 = vmatprep.subr.bf16.mxu0 %v5697_v6  ;;  %5462 = vmatprep.subr.bf16.mxu1 %v5697_v6 }
  0x35   : > { %5224 = vmatpush3.bf16.msra.mxu0 %v5697_v6  ;;  %5470 = vmatpush3.bf16.msra.mxu1 %v5697_v6 }
  0x36   : > { %5225 = vmatprep.subr.bf16.mxu0 %v5698_v8  ;;  %5463 = vmatprep.subr.bf16.mxu1 %v5698_v8 }
  0x39   : > { %5226 = vmatpush3.bf16.msra.mxu0 %v5698_v8  ;;  %5471 = vmatpush3.bf16.msra.mxu1 %v5698_v8 }
  0x3a   : > { %5227 = vmatprep.subr.bf16.mxu0 %v5699_v9  ;;  %5464 = vmatprep.subr.bf16.mxu1 %v5699_v9 }
  0x3d   : > { %5228 = vmatpush3.bf16.msra.mxu0 %v5699_v9  ;;  %5472 = vmatpush3.bf16.msra.mxu1 %v5699_v9 }
  0x3e   : > { %4781 = vmatprep.subr.bf16.mxu1 %v5716_v10  ;;  %5265 = vmatprep.subr.bf16.mxu0 %v5717_v12 }
  0x40   : > { %5230 = vmatmul.mubr.bf16.vlgmr.msra.gmra.mrb[0].mxu0 %v5701_v11  ;;  %5246 = vmatmul.mubr.bf16.vlgmr.msra.gmra.mrb[0].mxu1 %v5709_v14 }
  0x41   : > { %5233 = vmatprep.mubr.bf16.mxu0 %v5702_v13  ;;  %5249 = vmatprep.mubr.bf16.mxu1 %v5710_v15 }
  0x42   : > { %4782 = vmatpush3.bf16.msra.mxu1 %v5718_v16  ;;  %5266 = vmatpush3.bf16.msra.mxu0 %v5717_v12 }
  0x43   : > { %4783 = vmatprep.subr.bf16.mxu1 %v5719_v17  ;;  %5267 = vmatprep.subr.bf16.mxu0 %v5720_v18 }
  0x46   : > { %4784 = vmatpush3.bf16.msra.mxu1 %v5721_v19  ;;  %5268 = vmatpush3.bf16.msra.mxu0 %v5720_v18 }
  0x47   : > { %4785 = vmatprep.subr.bf16.mxu1 %v5722_v22  ;;  %5269 = vmatprep.subr.bf16.mxu0 %v5723_v25 }
  0x48   : > { %5234 = vmatmul.mubr.bf16.gmra.mrb[4].mxu0 %v5703_v20  ;;  %5250 = vmatmul.mubr.bf16.gmra.mrb[4].mxu1 %v5711_v21 }
  0x49   : > { %5237 = vmatprep.mubr.bf16.mxu0 %v5704_v23  ;;  %5253 = vmatprep.mubr.bf16.mxu1 %v5712_v24 }
  0x4a   : > { %4786 = vmatpush3.bf16.msra.mxu1 %v5724_v26  ;;  %5270 = vmatpush3.bf16.msra.mxu0 %v5723_v25 }
  0x4b   : > { %4787 = vmatprep.subr.bf16.mxu1 %v5725_v27  ;;  %5271 = vmatprep.subr.bf16.mxu0 %v5726_v28 }
  0x4e   : > { %4788 = vmatpush3.bf16.msra.mxu1 %v5727_v29  ;;  %5272 = vmatpush3.bf16.msra.mxu0 %v5726_v28 }
  0x4f   : > { %4789 = vmatprep.subr.bf16.mxu1 %v5728_v30  ;;  %5273 = vmatprep.subr.bf16.mxu0 %v5729_v31 }
  0x50   : > { %5238 = vmatmul.mubr.bf16.gmra.mrb[8].mxu0 %v5705_v32  ;;  %5254 = vmatmul.mubr.bf16.gmra.mrb[8].mxu1 %v5713_v33 }
  0x51   : > { %5241 = vmatprep.mubr.bf16.mxu0 %v5706_v34  ;;  %5257 = vmatprep.mubr.bf16.mxu1 %v5714_v35 }
  0x52   : > { %4790 = vmatpush3.bf16.msra.mxu1 %v5730_v36  ;;  %5274 = vmatpush3.bf16.msra.mxu0 %v5729_v31 }
  0x53   : > { %4791 = vmatprep.subr.bf16.mxu1 %v5731_v39  ;;  %5275 = vmatprep.subr.bf16.mxu0 %v5732_v40 }
  0x56   : > { %4792 = vmatpush3.bf16.msra.mxu1 %v5733_v41  ;;  %5276 = vmatpush3.bf16.msra.mxu0 %v5732_v40 }
  0x57   : > { %4793 = vmatprep.subr.bf16.mxu1 %v5736_v44  ;;  %5277 = vmatprep.subr.bf16.mxu0 %v5737_v45 }
  0x58   : > { %5242 = vmatmul.mubr.bf16.gmra.mrb[12].mxu0 %v5707_v37  ;;  %5258 = vmatmul.mubr.bf16.gmra.mrb[12].mxu1 %v5715_v38 }
  0x59   : > { %5261 = vmatprep.mubr.bf16.mxu1 %v5734_v42 }
  0x5a   : > { %4794 = vmatpush3.bf16.msra.mxu1 %v5738_v46  ;;  %5278 = vmatpush3.bf16.msra.mxu0 %v5737_v45 }
  0x5b   : > { %4795 = vmatprep.subr.bf16.mxu1 %v5739_v47  ;;  %5279 = vmatprep.subr.bf16.mxu0 %v5740_v48 }
  0x5e   : > { %4796 = vmatpush3.bf16.msra.mxu1 %v5741_v49  ;;  %5280 = vmatpush3.bf16.msra.mxu0 %v5740_v48 }
  0x5f   : > { %5313 = vmatprep.subr.bf16.mxu0 %v6121_v50  ;;  %4917 = vmatprep.subr.bf16.mxu1 %v5750_v51  ;;  %v5751_v51 = vld [vmem:[%s7356_s5] sm:$0xff]  }
  0x60   : > { %5262 = vmatmul.mubr.bf16.gmra.mrb[16].mxu1 %v5735_v43 }
 0x113   : > { %v5231_v55 = vpop.f32.mrb[0].mxu0  ;;  %v5247_v56 = vpop.f32.mrb[0].mxu1 }
 0x114   : > { %v924_v57 = vadd.f32 %v5231_v55, %v6132_v54  ;;  %v915_v58 = vpop.f32.mrb[1].mxu0  ;;  %v988_v61 = vadd.f32 %v5247_v56, %v6132_v54  ;;  %v979_v62 = vpop.f32.mrb[1].mxu1 }
 0x115   : > { %v916_v63 = vadd.f32 %v6132_v54, %v915_v58  ;;  %v5232_v0 = vpop.f32.mrb[2].mxu0  ;;  %v980_v2 = vadd.f32 %v6132_v54, %v979_v62  ;;  %v5248_v3 = vpop.f32.mrb[2].mxu1  ;;  %v5756_v58 = vld [vmem:[%s7356_s5 + $0x48] sm:$0xff]  }
 0x116   : > { %v1060_v4 = vmax.f32 %v924_v57, 0.0  ;;  %v927_v5 = vadd.f32 %v5232_v0, %v6132_v54  ;;  %v918_v6 = vpop.f32.mrb[3].mxu0  ;;  %v6145_v7 = vmax.f32 %v988_v61, 0.0  ;;  %v6148_v8 = vadd.f32 %v5248_v3, %v6132_v54  ;;  %v982_v9 = vpop.f32.mrb[3].mxu1 }
 0x117   : > { %v1058_v10 = vmax.f32 %v916_v63, 0.0  ;;  %v919_v11 = vadd.f32 %v6132_v54, %v918_v6  ;;  %v6151_v12 = vmax.f32 %v980_v2, 0.0  ;;  %v6154_v13 = vadd.f32 %v6132_v54, %v982_v9  ;;  %v5743_v63 = vld [vmem:[%s7356_s5 + $0x88] sm:$0xff]  }
 0x118   : > { %v1226_v14 = vrot.slane %v1060_v4, 7  ;;  %v1293_v15 = vrot.slane %v1060_v4, 1  ;;  %v1061_v16 = vmax.f32 %v927_v5, 0.0 }
 0x119   : > { %v1225_v18 = vrot.slane %v1058_v10, 7  ;;  %v1292_v19 = vrot.slane %v1058_v10, 1  ;;  %v1059_v20 = vmax.f32 %v919_v11, 0.0  ;;  %v1300_v5 = vrot.slane %v6151_v12, 1 }
 0x11a   : > { %v1242_v22 = vrot.slane %v1061_v16, 7  ;;  %v1309_v23 = vrot.slane %v1061_v16, 1  ;;  %v6158_v24 = vpack.c.bf16 %v1061_v16, %v1060_v4  ;;  %v1277_v25 = vsel %vm1258_vm0, %v6135_v60, %v1226_v14 }
 0x11b   : > { %v1276_v26 = vsel %vm1258_vm0, %v6135_v60, %v1225_v18  ;;  %v1241_v27 = vrot.slane %v1059_v20, 7  ;;  %v1308_v28 = vrot.slane %v1059_v20, 1  ;;  %v5235_v29 = vpop.f32.mrb[4].mxu0  ;;  %v6166_v30 = vpack.c.bf16 %v1059_v20, %v1058_v10  ;;  %v6168_v31 = vpop.f32.mrb[4].mxu1 }
 0x11c   : > { %v1342_v32 = vsel %vm1339_vm1, %v1309_v23, %v6140_v1  ;;  %v1358_v33 = vsel %vm1339_vm1, %v1293_v15, %v1309_v23  ;;  %v940_v34 = vadd.f32 %v5235_v29, %v6132_v54  ;;  %v931_v35 = vpop.f32.mrb[5].mxu0  ;;  %v1261_v36 = vsel %vm1258_vm0, %v1226_v14, %v1242_v22  ;;  %v6178_v37 = vpop.f32.mrb[5].mxu1  ;;  %v5757_v14 = vld [vmem:[%s7356_s5 + $0x8] sm:$0xff]  }
 0x11d   : > { %v6180_v38 = vpack.c.bf16 %v1342_v32, %v1358_v33  ;;  %v1260_v39 = vsel %vm1258_vm0, %v1225_v18, %v1241_v27  ;;  %v932_v40 = vadd.f32 %v6132_v54, %v931_v35  ;;  %v5236_v41 = vpop.f32.mrb[6].mxu0  ;;  %1965 = vmatprep.mubr.bf16.mxu1 %v6166_v30  ;;  %v1341_v42 = vsel %vm1339_vm1, %v1308_v28, %v6140_v1  ;;  %v6189_v43 = vpop.f32.mrb[6].mxu1 }
 0x11e   : > { %v6191_v44 = vpack.c.bf16 %v1260_v39, %v1276_v26  ;;  %v6193_v45 = vmax.f32 %v940_v34, 0.0  ;;  %v943_v46 = vadd.f32 %v5236_v41, %v6132_v54  ;;  %v934_v47 = vpop.f32.mrb[7].mxu0  ;;  %v1357_v48 = vsel %vm1339_vm1, %v1292_v19, %v1308_v28  ;;  %v6198_v49 = vpop.f32.mrb[7].mxu1 }
 0x11f   : > { %v1062_v52 = vmax.f32 %v932_v40, 0.0  ;;  %v935_v55 = vadd.f32 %v6132_v54, %v934_v47  ;;  %v6204_v56 = vpack.c.bf16 %v1341_v42, %v1357_v48  ;;  %v6206_v57 = vpack.c.bf16 %v1261_v36, %v1277_v25  ;;  %v5744_v36 = vld [vmem:[%s7356_s5 + $0x90] sm:$0xff]  }
 0x120   : > { %v1228_v59 = vrot.slane %v6193_v45, 7  ;;  %v1295_v61 = vrot.slane %v6193_v45, 1  ;;  %v6213_v62 = vmax.f32 %v943_v46, 0.0  ;;  %1966 = vmatmul.mubr.bf16.vlgmr.msra.gmra.mrb[20].mxu1 %v6191_v44  ;;  %v6231_v11 = vmax.f32 %v6148_v8, 0.0  ;;  %v5762_v8 = vld [vmem:[%s7356_s5 + $0x50] sm:$0xff]  }
 0x121   : > { %v1227_v2 = vrot.slane %v1062_v52, 7  ;;  %v1294_v3 = vrot.slane %v1062_v52, 1  ;;  %v1063_v4 = vmax.f32 %v935_v55, 0.0  ;;  %5281 = vmatprep.mubr.bf16.mxu0 %v6204_v56  ;;  %1973 = vmatprep.mubr.bf16.mxu1 %v6158_v24 }
 0x122   : > { %v1244_v6 = vrot.slane %v6213_v62, 7  ;;  %v1311_v9 = vrot.slane %v6213_v62, 1  ;;  %5282 = vmatmul.mubr.bf16.vlgmr.msra.gmra.mrb[16].mxu0 %v6180_v38  ;;  %v6228_v10 = vpack.c.bf16 %v6213_v62, %v6193_v45  ;;  %4918 = vmatpush3.bf16.msra.mxu1 %v5751_v51  ;;  %v5763_v51 = vld [vmem:[%s7356_s5 + $0x10] sm:$0xff]   ;;  %v5746_v45 = vld [vmem:[%s7356_s5 + $0xa0] sm:$0xff]  }
 0x123   : > { %v1243_v15 = vrot.slane %v1063_v4, 7  ;;  %v1310_v16 = vrot.slane %v1063_v4, 1  ;;  %5314 = vmatpush3.bf16.msra.mxu0 %v6121_v50  ;;  %v5239_v18 = vpop.f32.mrb[8].mxu0  ;;  %v6237_v19 = vpack.c.bf16 %v1063_v4, %v1062_v52  ;;  %v1278_v20 = vsel %vm1258_vm0, %v6135_v60, %v1227_v2  ;;  %v6242_v22 = vpop.f32.mrb[8].mxu1  ;;  %4919 = vmatprep.subr.bf16.mxu1 %v5756_v58 }
 0x124   : > { %v956_v23 = vadd.f32 %v5239_v18, %v6132_v54  ;;  %v947_v25 = vpop.f32.mrb[9].mxu0  ;;  %5315 = vmatprep.subr.bf16.mxu0 %v5743_v63  ;;  %v1344_v50 = vsel %vm1339_vm1, %v1311_v9, %v6140_v1  ;;  %v1360_v26 = vsel %vm1339_vm1, %v1295_v61, %v1311_v9  ;;  %v6254_v28 = vpop.f32.mrb[9].mxu1 }
 0x125   : > { %v948_v29 = vadd.f32 %v6132_v54, %v947_v25  ;;  %v5240_v32 = vpop.f32.mrb[10].mxu0  ;;  %v1343_v33 = vsel %vm1339_vm1, %v1310_v16, %v6140_v1  ;;  %v1359_v34 = vsel %vm1339_vm1, %v1294_v3, %v1310_v16  ;;  %v6262_v35 = vpack.c.bf16 %v1344_v50, %v1360_v26  ;;  %v6267_v39 = vpop.f32.mrb[10].mxu1  ;;  %v5769_v50 = vld [vmem:[%s7356_s5 + $0x18] sm:$0xff]  }
 0x126   : > { %v6269_v40 = vmax.f32 %v956_v23, 0.0  ;;  %v959_v41 = vadd.f32 %v5240_v32, %v6132_v54  ;;  %v950_v42 = vpop.f32.mrb[11].mxu0  ;;  %v6272_v46 = vpack.c.bf16 %v1343_v33, %v1359_v34  ;;  %v1262_v47 = vsel %vm1258_vm0, %v1227_v2, %v1243_v15  ;;  %v6276_v48 = vpop.f32.mrb[11].mxu1  ;;  %4920 = vmatpush3.bf16.msra.mxu1 %v5757_v14  ;;  %v5768_v2 = vld [vmem:[%s7356_s5 + $0x58] sm:$0xff]  }
 0x127   : > { %v6281_v52 = vmax.f32 %v948_v29, 0.0  ;;  %v951_v55 = vadd.f32 %v6132_v54, %v950_v42  ;;  %5316 = vmatpush3.bf16.msra.mxu0 %v5743_v63  ;;  %v6284_v58 = vpack.c.bf16 %v1262_v47, %v1278_v20  ;;  %4921 = vmatprep.subr.bf16.mxu1 %v5762_v8  ;;  %v6297_v63 = vmax.f32 %v6154_v13, 0.0  ;;  %v5745_v14 = vld [vmem:[%s7356_s5 + $0x98] sm:$0xff]  }
 0x128   : > { %v1297_v4 = vrot.slane %v6269_v40, 1  ;;  %v6292_v9 = vmax.f32 %v959_v41, 0.0  ;;  %1974 = vmatmul.mubr.bf16.gmra.mrb[24].mxu1 %v6206_v57  ;;  %5285 = vmatprep.mubr.bf16.mxu0 %v6272_v46  ;;  %v1004_v20 = vadd.f32 %v6168_v31, %v6132_v54  ;;  %v1263_v33 = vsel %vm1258_vm0, %v1228_v59, %v1244_v6  ;;  %v5770_v41 = vld [vmem:[%s7356_s5 + $0x60] sm:$0xff]  }
 0x129   : > { %v1229_v15 = vrot.slane %v6281_v52, 7  ;;  %v1296_v16 = vrot.slane %v6281_v52, 1  ;;  %v6304_v18 = vmax.f32 %v951_v55, 0.0  ;;  %1981 = vmatprep.mubr.bf16.mxu1 %v6237_v19  ;;  %5317 = vmatprep.subr.bf16.mxu0 %v5744_v36  ;;  %v1316_v25 = vrot.slane %v6297_v63, 1 }
 0x12a   : > { %v1313_v13 = vrot.slane %v6292_v9, 1  ;;  %5286 = vmatmul.mubr.bf16.gmra.mrb[20].mxu0 %v6262_v35  ;;  %4922 = vmatpush3.bf16.msra.mxu1 %v5763_v51  ;;  %v6319_v32 = vmax.f32 %v1004_v20, 0.0  ;;  %v1279_v6 = vsel %vm1258_vm0, %v6135_v60, %v1228_v59 }
 0x12b   : > { %v1245_v26 = vrot.slane %v6304_v18, 7  ;;  %v1312_v29 = vrot.slane %v6304_v18, 1  ;;  %v5243_v31 = vpop.f32.mrb[12].mxu0  ;;  %5318 = vmatpush3.bf16.msra.mxu0 %v5744_v36  ;;  %v6327_v34 = vpop.f32.mrb[12].mxu1  ;;  %4923 = vmatprep.subr.bf16.mxu1 %v5768_v2 }
 0x12c   : > { %v972_v42 = vadd.f32 %v5243_v31, %v6132_v54  ;;  %v963_v47 = vpop.f32.mrb[13].mxu0  ;;  %v1346_v36 = vsel %vm1339_vm1, %v1313_v13, %v6140_v1  ;;  %v1362_v62 = vsel %vm1339_vm1, %v1297_v4, %v1313_v13  ;;  %5319 = vmatprep.subr.bf16.mxu0 %v5745_v14  ;;  %v6343_v51 = vpop.f32.mrb[13].mxu1 }
 0x12d   : > { %v964_v55 = vadd.f32 %v6132_v54, %v963_v47  ;;  %v5244_v2 = vpop.f32.mrb[14].mxu0  ;;  %v1345_v20 = vsel %vm1339_vm1, %v1312_v29, %v6140_v1  ;;  %v1361_v31 = vsel %vm1339_vm1, %v1296_v16, %v1312_v29  ;;  %v6351_v4 = vpack.c.bf16 %v1346_v36, %v1362_v62  ;;  %v6356_v59 = vpop.f32.mrb[14].mxu1  ;;  %v5772_v16 = vld [vmem:[%s7356_s5 + $0x20] sm:$0xff]  }
 0x12e   : > { %v6358_v13 = vmax.f32 %v972_v42, 0.0  ;;  %v975_v47 = vadd.f32 %v5244_v2, %v6132_v54  ;;  %v966_v17 = vpop.f32.mrb[15].mxu0  ;;  %v6361_v27 = vpack.c.bf16 %v1345_v20, %v1361_v31  ;;  %v6364_v23 = vpop.f32.mrb[15].mxu1  ;;  %4924 = vmatpush3.bf16.msra.mxu1 %v5769_v50  ;;  %v6373_v62 = vpack.c.bf16 %v1263_v33, %v1279_v6  ;;  %v5774_v2 = vld [vmem:[%s7356_s5 + $0x68] sm:$0xff]  }
 0x12f   : > { %v6369_v29 = vmax.f32 %v964_v55, 0.0  ;;  %v967_v36 = vadd.f32 %v6132_v54, %v966_v17  ;;  %5320 = vmatpush3.bf16.msra.mxu0 %v5745_v14  ;;  %4925 = vmatprep.subr.bf16.mxu1 %v5770_v41  ;;  %v996_v17 = vadd.f32 %v6132_v54, %v6178_v37  ;;  %v5747_v14 = vld [vmem:[%s7356_s5 + $0xa8] sm:$0xff]   ;;  %v6396_v55 = vpack.c.bf16 %v6304_v18, %v6281_v52 }
 0x130   : > { %v1299_v20 = vrot.slane %v6358_v13, 1  ;;  %v6380_v31 = vmax.f32 %v975_v47, 0.0  ;;  %1982 = vmatmul.mubr.bf16.gmra.mrb[28].mxu1 %v6284_v58  ;;  %5289 = vmatprep.mubr.bf16.mxu0 %v6361_v27  ;;  %v1007_v50 = vadd.f32 %v6189_v43, %v6132_v54  ;;  %v999_v47 = vadd.f32 %v6132_v54, %v6198_v49  ;;  %v5776_v43 = vld [vmem:[%s7356_s5 + $0x70] sm:$0xff]  }
 0x131   : > { %v1298_v41 = vrot.slane %v6369_v29, 1  ;;  %v6391_v6 = vmax.f32 %v967_v36, 0.0  ;;  %1989 = vmatprep.mubr.bf16.mxu1 %v6228_v10  ;;  %7373 = vst [vmem:[#allocation6_spill] sm:$0xff] %v6396_v55  ;;  %5321 = vmatprep.subr.bf16.mxu0 %v5746_v45  ;;  %v6401_v0 = vmax.f32 %v996_v17, 0.0  ;;  %v5775_v36 = vld [vmem:[%s7356_s5 + $0x28] sm:$0xff]   ;;  %v1349_v17 = vsel %vm1339_vm1, %v1316_v25, %v6140_v1 }
 0x132   : > { %v1315_v37 = vrot.slane %v6380_v31, 1  ;;  %5290 = vmatmul.mubr.bf16.gmra.mrb[24].mxu0 %v6351_v4  ;;  %4926 = vmatpush3.bf16.msra.mxu1 %v5772_v16  ;;  %v6434_v16 = vmax.f32 %v1007_v50, 0.0  ;;  %v6438_v61 = vmax.f32 %v999_v47, 0.0  ;;  %v1280_v18 = vsel %vm1258_vm0, %v6135_v60, %v1229_v15 }
 0x133   : > { %v1314_v42 = vrot.slane %v6391_v6, 1  ;;  %5322 = vmatpush3.bf16.msra.mxu0 %v5746_v45  ;;  %4927 = vmatprep.subr.bf16.mxu1 %v5774_v2  ;;  %v1302_v33 = vrot.slane %v6401_v0, 1  ;;  %v6485_v52 = vpack.c.bf16 %v6292_v9, %v6269_v40 }
 0x134   : > { %v1348_v49 = vsel %vm1339_vm1, %v1315_v37, %v6140_v1  ;;  %v1364_v3 = vsel %vm1339_vm1, %v1299_v20, %v1315_v37  ;;  %5323 = vmatprep.subr.bf16.mxu0 %v5747_v14  ;;  %v1365_v20 = vsel %vm1339_vm1, %v1300_v5, %v1316_v25  ;;  %v1020_v37 = vadd.f32 %v6242_v22, %v6132_v54 }
 0x135   : > { %v1347_v45 = vsel %vm1339_vm1, %v1314_v42, %v6140_v1  ;;  %v1363_v2 = vsel %vm1339_vm1, %v1298_v41, %v1314_v42  ;;  %v6432_v8 = vpack.c.bf16 %v1348_v49, %v1364_v3  ;;  %v5748_v3 = vld [vmem:[%s7356_s5 + $0xb0] sm:$0xff]   ;;  %v1319_v50 = vrot.slane %v6434_v16, 1  ;;  %7375 = vst [vmem:[#allocation8_spill] sm:$0xff] %v6485_v52  ;;  %v5780_v49 = vld [vmem:[%s7356_s5 + $0x78] sm:$0xff]  }
 0x136   : > { %v6436_v21 = vpack.c.bf16 %v1347_v45, %v1363_v2  ;;  %4928 = vmatpush3.bf16.msra.mxu1 %v5775_v36  ;;  %v6453_v41 = vpack.c.bf16 %v1349_v17, %v1365_v20  ;;  %v1264_v5 = vsel %vm1258_vm0, %v1229_v15, %v1245_v26  ;;  %v1318_v25 = vrot.slane %v6438_v61, 1  ;;  %v5749_v26 = vld [vmem:[%s7356_s5 + $0xb8] sm:$0xff]  }
 0x137   : > { %5324 = vmatpush3.bf16.msra.mxu0 %v5747_v14  ;;  %4929 = vmatprep.subr.bf16.mxu1 %v5776_v43  ;;  %v6465_v47 = vmax.f32 %v1020_v37, 0.0  ;;  %v5778_v14 = vld [vmem:[%s7356_s5 + $0x30] sm:$0xff]   ;;  %v6479_v36 = vpack.c.bf16 %v1264_v5, %v1280_v18  ;;  %v1012_v17 = vadd.f32 %v6132_v54, %v6254_v28  ;;  %v7376_v15 = vrot.slane %v6231_v11, 1 }
 0x138   : > { %1990 = vmatmul.mubr.bf16.gmra.mrb[32].mxu1 %v6373_v62  ;;  %5293 = vmatprep.mubr.bf16.mxu0 %v6436_v21  ;;  %v7378_v20 = vrot.slane %v6145_v7, 1  ;;  %v1023_v5 = vadd.f32 %v6267_v39, %v6132_v54  ;;  %v1015_v45 = vadd.f32 %v6132_v54, %v6276_v48  ;;  %v1351_v42 = vsel %vm1339_vm1, %v1318_v25, %v6140_v1 }
 0x139   : > { %1997 = vmatprep.mubr.bf16.mxu1 %v6396_v55  ;;  %7374 = vst [vmem:[#allocation7_spill] sm:$0xff] %v6479_v36  ;;  %v1350_v43 = vsel %vm1339_vm1, %v7376_v15, %v6140_v1  ;;  %v1305_v28 = vrot.slane %v6465_v47, 1  ;;  %v7377_v2 = vmov %v7376_v15  ;;  %5325 = vmatprep.subr.bf16.mxu0 %v5748_v3  ;;  %v6507_v18 = vmax.f32 %v1012_v17, 0.0 }
 0x13a   : > { %5294 = vmatmul.mubr.bf16.gmra.mrb[28].mxu0 %v6432_v8  ;;  %v1366_v37 = vsel %vm1339_vm1, %v7378_v20, %v7377_v2  ;;  %v6516_v22 = vmax.f32 %v1023_v5, 0.0  ;;  %v1367_v39 = vsel %vm1339_vm1, %v1302_v33, %v1318_v25  ;;  %v1036_v2 = vadd.f32 %v6327_v34, %v6132_v54  ;;  %4930 = vmatpush3.bf16.msra.mxu1 %v5778_v14 }
 0x13b   : > { %5297 = vmatprep.mubr.bf16.mxu0 %v6453_v41  ;;  %v6509_v15 = vpack.c.bf16 %v1350_v43, %v1366_v37  ;;  %5326 = vmatpush3.bf16.msra.mxu0 %v5748_v3  ;;  %v7379_v17 = vrot.slane %v6292_v9, 7  ;;  %v7380_v43 = vrot.slane %v6269_v40, 7  ;;  %v5752_v3 = vld [vmem:[%s7356_s5 + $0x1c0] sm:$0xff]   ;;  %v1304_v33 = vrot.slane %v6507_v18, 1  ;;  %v5781_v9 = vld [vmem:[%s7356_s5 + $0x38] sm:$0xff]  }
 0x13c   : > { %5327 = vmatprep.subr.bf16.mxu0 %v5749_v26  ;;  %v6533_v25 = vmax.f32 %v1015_v45, 0.0  ;;  %v6535_v34 = vpack.c.bf16 %v1351_v42, %v1367_v39  ;;  %4931 = vmatprep.subr.bf16.mxu1 %v5780_v49  ;;  %v1321_v5 = vrot.slane %v6516_v22, 1  ;;  %v6560_v37 = vpack.c.bf16 %v6391_v6, %v6369_v29 }
 0x13d   : > { %v1265_v48 = vsel %vm1258_vm0, %v7380_v43, %v7379_v17  ;;  %v6542_v17 = vmax.f32 %v1036_v2, 0.0  ;;  %v7381_v14 = vmov %v7380_v43  ;;  %v1028_v43 = vadd.f32 %v6132_v54, %v6343_v51 }
 0x13e   : > { %v1281_v45 = vsel %vm1258_vm0, %v6135_v60, %v7381_v14  ;;  %v1320_v49 = vrot.slane %v6533_v25, 1  ;;  %v1352_v14 = vsel %vm1339_vm1, %v1319_v50, %v6140_v1  ;;  %v7382_v51 = vrot.slane %v6319_v32, 1  ;;  %4932 = vmatpush3.bf16.msra.mxu1 %v5781_v9 }
 0x13f   : > { %v6551_v39 = vpack.c.bf16 %v1265_v48, %v1281_v45  ;;  %5328 = vmatpush3.bf16.msra.mxu0 %v5749_v26  ;;  %v1627_v40 = vrot.slane %v6542_v17, 1  ;;  %v6566_v48 = vmax.f32 %v1028_v43, 0.0  ;;  %v1039_v45 = vadd.f32 %v6356_v59, %v6132_v54 }
 0x140   : > { %1998 = vmatmul.mubr.bf16.gmra.mrb[36].mxu1 %v6479_v36  ;;  %5053 = vmatprep.subr.bf16.mxu0 %v5752_v3  ;;  %v1368_v26 = vsel %vm1339_vm1, %v7382_v51, %v1319_v50  ;;  %v1031_v2 = vadd.f32 %v6132_v54, %v6364_v23  ;;  %v1353_v3 = vsel %vm1339_vm1, %v1320_v49, %v6140_v1  ;;  %v7383_v50 = vrot.slane %v6391_v6, 7 }
 0x141   : > { %2005 = vmatprep.mubr.bf16.mxu1 %v6485_v52  ;;  %v6577_v20 = vpack.c.bf16 %v1352_v14, %v1368_v26  ;;  %v1369_v43 = vsel %vm1339_vm1, %v1304_v33, %v1320_v49  ;;  %v7384_v51 = vrot.slane %v6369_v29, 7  ;;  %v1239_v54 = vrot.slane %v6566_v48, 7 }
 0x142   : > { %5298 = vmatmul.mubr.bf16.gmra.mrb[32].mxu0 %v6509_v15  ;;  %v1306_v23 = vrot.slane %v6566_v48, 1  ;;  %v1089_v9 = vmax.f32 %v1039_v45, 0.0  ;;  %v1087_v14 = vmax.f32 %v1031_v2, 0.0  ;;  %v6593_v26 = vpack.c.bf16 %v1353_v3, %v1369_v43 }
 0x143   : > { %v1266_v59 = vsel %vm1258_vm0, %v7384_v51, %v7383_v50  ;;  %5301 = vmatprep.mubr.bf16.mxu0 %v6535_v34  ;;  %v7385_v42 = vmov %v7384_v51  ;;  %v6602_v33 = vpack.c.bf16 %v6380_v31, %v6358_v13  ;;  %v1354_v49 = vsel %vm1339_vm1, %v1321_v5, %v6140_v1 }
 0x144   : > { %v1282_v6 = vsel %vm1258_vm0, %v6135_v60, %v7385_v42  ;;  %v1579_v50 = vrot.slane %v1089_v9, 7  ;;  %v1643_v51 = vrot.slane %v1089_v9, 1  ;;  %v1255_v45 = vrot.slane %v1087_v14, 7 }
 0x145   : > { %v1322_v2 = vrot.slane %v1087_v14, 1  ;;  %v6607_v3 = vpack.c.bf16 %v1266_v59, %v1282_v6  ;;  %v1370_v29 = vsel %vm1339_vm1, %v1305_v28, %v1321_v5  ;;  %v7386_v42 = vrot.slane %v6380_v31, 7 }
 0x146   : > { %v7387_v43 = vrot.slane %v6358_v13, 7  ;;  %v6624_v59 = vpack.c.bf16 %v1354_v49, %v1370_v29  ;;  %v6638_v13 = vpack.c.bf16 %v6297_v63, %v6151_v12  ;;  %v1691_v49 = vsel %vm1339_vm1, %v1627_v40, %v1643_v51 }
 0x147   : > { %v1355_v6 = vsel %vm1339_vm1, %v1322_v2, %v6140_v1  ;;  %v1371_v31 = vsel %vm1339_vm1, %v1306_v23, %v1322_v2  ;;  %v6661_v40 = vpack.c.bf16 %v6231_v11, %v6145_v7 }
 0x148   : > { %v1267_v52 = vsel %vm1258_vm0, %v7387_v43, %v7386_v42  ;;  %v7388_v36 = vmov %v7387_v43  ;;  %2006 = vmatmul.mubr.bf16.gmra.mrb[40].mxu1 %v6551_v39  ;;  %v6634_v5 = vpack.c.bf16 %v1355_v6, %v1371_v31  ;;  %v7393_v43 = vrot.slane %v6145_v7, 7 }
 0x149   : > { %v1283_v55 = vsel %vm1258_vm0, %v6135_v60, %v7388_v36  ;;  %v1675_v36 = vsel %vm1339_vm1, %v1643_v51, %v6140_v1  ;;  %2013 = vmatprep.mubr.bf16.mxu1 %v6560_v37 }
 0x14a   : > { %v6631_v28 = vpack.c.bf16 %v1267_v52, %v1283_v55  ;;  %v6646_v23 = vpack.c.bf16 %v1675_v36, %v1691_v49  ;;  %v7389_v55 = vrot.slane %v6297_v63, 7  ;;  %v7390_v52 = vrot.slane %v6151_v12, 7  ;;  %5302 = vmatmul.mubr.bf16.gmra.mrb[36].mxu0 %v6577_v20 }
 0x14b   : > { %v7392_v63 = vrot.slane %v6231_v11, 7  ;;  %v7394_v12 = vmov %v7393_v43  ;;  %v6679_v36 = vpack.c.bf16 %v6438_v61, %v6401_v0  ;;  %5305 = vmatprep.mubr.bf16.mxu0 %v6593_v26  ;;  %v7395_v11 = vrot.slane %v6438_v61, 7 }
 0x14c   : > { %v1268_v2 = vsel %vm1258_vm0, %v7390_v52, %v7389_v55  ;;  %v7391_v29 = vmov %v7390_v52  ;;  %v1285_v31 = vsel %vm1258_vm0, %v6135_v60, %v7394_v12  ;;  %v7396_v55 = vrot.slane %v6401_v0, 7 }
 0x14d   : > { %v1284_v42 = vsel %vm1258_vm0, %v6135_v60, %v7391_v29  ;;  %v1269_v6 = vsel %vm1258_vm0, %v7393_v43, %v7392_v63  ;;  %v6697_v29 = vpack.c.bf16 %v6434_v16, %v6319_v32  ;;  %v7398_v63 = vrot.slane %v6434_v16, 7 }
 0x14e   : > { %v6664_v51 = vpack.c.bf16 %v1268_v2, %v1284_v42  ;;  %v6682_v49 = vpack.c.bf16 %v1269_v6, %v1285_v31  ;;  %v1270_v52 = vsel %vm1258_vm0, %v7396_v55, %v7395_v11  ;;  %v7397_v7 = vmov %v7396_v55 }
 0x14f   : > { %v1286_v2 = vsel %vm1258_vm0, %v6135_v60, %v7397_v7  ;;  %v7399_v61 = vrot.slane %v6319_v32, 7  ;;  %v6714_v12 = vpack.c.bf16 %v6533_v25, %v6507_v18  ;;  %v7401_v11 = vrot.slane %v6533_v25, 7 }
 0x150   : > { %v6699_v42 = vpack.c.bf16 %v1270_v52, %v1286_v2  ;;  %v7402_v16 = vrot.slane %v6507_v18, 7  ;;  %v6731_v7 = vpack.c.bf16 %v6516_v22, %v6465_v47  ;;  %v7405_v25 = vrot.slane %v6465_v47, 7  ;;  %2014 = vmatmul.mubr.bf16.gmra.mrb[44].mxu1 %v6607_v3 }
 0x151   : > { %v1271_v43 = vsel %vm1258_vm0, %v7399_v61, %v7398_v63  ;;  %v7400_v6 = vmov %v7399_v61  ;;  %v7404_v63 = vrot.slane %v6516_v22, 7  ;;  %v1290_v22 = vsel %vm1258_vm0, %v6135_v60, %v1239_v54  ;;  %2021 = vmatprep.mubr.bf16.mxu1 %v6602_v33 }
 0x152   : > { %v1287_v0 = vsel %vm1258_vm0, %v6135_v60, %v7400_v6  ;;  %v1272_v55 = vsel %vm1258_vm0, %v7402_v16, %v7401_v11  ;;  %v7403_v52 = vmov %v7402_v16  ;;  %v6747_v6 = vpack.c.bf16 %v1087_v14, %v6566_v48  ;;  %5306 = vmatmul.mubr.bf16.gmra.mrb[40].mxu0 %v6624_v59 }
 0x153   : > { %v6716_v31 = vpack.c.bf16 %v1271_v43, %v1287_v0  ;;  %v1288_v32 = vsel %vm1258_vm0, %v6135_v60, %v7403_v52  ;;  %v1273_v61 = vsel %vm1258_vm0, %v7405_v25, %v7404_v63  ;;  %v7406_v43 = vmov %v7405_v25  ;;  %5309 = vmatprep.mubr.bf16.mxu0 %v6634_v5  ;;  %v5759_v52 = vld [vmem:[%s7356_s5 + $0x190] sm:$0xff]   ;;  %v5263_v63 = vpop.f32.mrb[16].mxu1  ;;  %v5764_v25 = vld [vmem:[%s7356_s5 + $0x1e0] sm:$0xff]  }
 0x154   : > { %v6733_v2 = vpack.c.bf16 %v1272_v55, %v1288_v32  ;;  %v1289_v18 = vsel %vm1258_vm0, %v6135_v60, %v7406_v43  ;;  %v1274_v11 = vsel %vm1258_vm0, %v1239_v54, %v1255_v45  ;;  %v6757_v16 = vpack.c.bf16 %v1089_v9, %v6542_v17  ;;  %v5761_v32 = vld [vmem:[%s7356_s5 + $0x198] sm:$0xff]   ;;  %v7411_v63 = vld [vmem:[#allocation8_spill] sm:$0xff] }
 0x155   : > { %v6749_v0 = vpack.c.bf16 %v1273_v61, %v1289_v18  ;;  %v6760_v47 = vpack.c.bf16 %v1274_v11, %v1290_v22  ;;  %v7407_v55 = vrot.slane %v6542_v17, 7  ;;  %v6778_v9 = vpack.c.bf16 %v6140_v1, %v6140_v1  ;;  %v5754_v17 = vld [vmem:[%s7356_s5 + $0x1c8] sm:$0xff]   ;;  %v1043_v61 = vpop.f32.mrb[17].mxu1  ;;  %v5765_v11 = vld [vmem:[%s7356_s5 + $0x1a0] sm:$0xff]  }
 0x156   : > { %v5755_v1 = vld [vmem:[%s7356_s5 + $0x188] sm:$0xff]   ;;  %v5264_v43 = vpop.f32.mrb[18].mxu1 }
 0x157   : > { %v1595_v48 = vsel %vm1258_vm0, %v7407_v55, %v1579_v50  ;;  %v7408_v14 = vmov %v7407_v55  ;;  %v5758_v50 = vld [vmem:[%s7356_s5 + $0x1d0] sm:$0xff]   ;;  %v1046_v18 = vpop.f32.mrb[19].mxu1  ;;  %v5766_v22 = vld [vmem:[%s7356_s5 + $0x1e8] sm:$0xff]  }
 0x158   : > { %v1611_v45 = vsel %vm1258_vm0, %v6135_v60, %v7408_v14  ;;  %2022 = vmatmul.mubr.bf16.gmra.mrb[48].mxu1 %v6631_v28  ;;  %v5767_v55 = vld [vmem:[%s7356_s5 + $0x1a8] sm:$0xff]   ;;  %v5773_v14 = vld [vmem:[%s7356_s5 + $0x1b0] sm:$0xff]  }
 0x159   : > { %v6772_v54 = vpack.c.bf16 %v1595_v48, %v1611_v45  ;;  %2029 = vmatprep.mubr.bf16.mxu1 %v6638_v13  ;;  %v5771_v48 = vld [vmem:[%s7356_s5 + $0x1f0] sm:$0xff]   ;;  %v5777_v45 = vld [vmem:[%s7356_s5 + $0x1f8] sm:$0xff]  }
 0x15a   : > { %5310 = vmatmul.mubr.bf16.gmra.mrb[44].mxu0 %v6646_v23 }
 0x15b   : > { %5329 = vmatprep.mubr.bf16.mxu0 %v6778_v9 }
 0x160   : > { %2030 = vmatmul.mubr.bf16.gmra.mrb[52].mxu1 %v6664_v51 }
 0x161   : > { %2037 = vmatprep.mubr.bf16.mxu1 %v6661_v40 }
 0x162   : > { %5330 = vmatmul.mubr.bf16.vlgmr.msra.gmra.mrb[16].mxu0 %v6204_v56  ;;  %v5760_v56 = vld [vmem:[%s7356_s5 + $0x1d8] sm:$0xff]  }
 0x163   : > { %5054 = vmatpush3.bf16.msra.mxu0 %v5753_v53  ;;  %5333 = vmatprep.mubr.bf16.mxu0 %v6180_v38  ;;  %v5779_v53 = vld [vmem:[%s7356_s5 + $0x1b8] sm:$0xff]  }
 0x164   : > { %5055 = vmatprep.subr.bf16.mxu0 %v5754_v17  ;;  %v5782_v17 = vld [vmem:[%s7356_s5 + $0x200] sm:$0xff]  }
 0x167   : > { %5056 = vmatpush3.bf16.msra.mxu0 %v5755_v1  ;;  %v5879_v1 = vmov 0.0|0.0  }
 0x168   : > { %2038 = vmatmul.mubr.bf16.gmra.mrb[56].mxu1 %v6682_v49  ;;  %5057 = vmatprep.subr.bf16.mxu0 %v5758_v50  ;;  %v6866_v50 = vpack.c.bf16 %v6135_v60, %v6135_v60  ;;  %v5785_v60 = vld [vmem:[%s7356_s5 + $0x218] sm:$0xff]  }
 0x169   : > { %2045 = vmatprep.mubr.bf16.mxu1 %v6679_v36 }
 0x16a   : > { %5334 = vmatmul.mubr.bf16.gmra.mrb[20].mxu0 %v6272_v46 }
 0x16b   : > { %5337 = vmatprep.mubr.bf16.mxu0 %v6262_v35  ;;  %5058 = vmatpush3.bf16.msra.mxu0 %v5759_v52  ;;  %v5783_v52 = vld [vmem:[%s7356_s5 + $0x208] sm:$0xff]  }
 0x16c   : > { %5059 = vmatprep.subr.bf16.mxu0 %v5760_v56  ;;  %v5784_v56 = vld [vmem:[%s7356_s5 + $0x210] sm:$0xff]  }
 0x16f   : > { %5060 = vmatpush3.bf16.msra.mxu0 %v5761_v32  ;;  %v5788_v32 = vld [vmem:[%s7356_s5 + $0x230] sm:$0xff]  }
 0x170   : > { %2046 = vmatmul.mubr.bf16.gmra.mrb[60].mxu1 %v6699_v42  ;;  %5061 = vmatprep.subr.bf16.mxu0 %v5764_v25 }
 0x171   : > { %2053 = vmatprep.mubr.bf16.mxu1 %v6697_v29 }
 0x172   : > { %5338 = vmatmul.mubr.bf16.gmra.mrb[24].mxu0 %v6361_v27 }
 0x173   : > { %5341 = vmatprep.mubr.bf16.mxu0 %v6351_v4  ;;  %5062 = vmatpush3.bf16.msra.mxu0 %v5765_v11 }
 0x174   : > { %5063 = vmatprep.subr.bf16.mxu0 %v5766_v22 }
 0x177   : > { %5064 = vmatpush3.bf16.msra.mxu0 %v5767_v55 }
 0x178   : > { %2054 = vmatmul.mubr.bf16.gmra.mrb[64].mxu1 %v6716_v31  ;;  %5065 = vmatprep.subr.bf16.mxu0 %v5771_v48 }
 0x179   : > { %2061 = vmatprep.mubr.bf16.mxu1 %v6714_v12 }
 0x17a   : > { %5342 = vmatmul.mubr.bf16.gmra.mrb[28].mxu0 %v6436_v21 }
 0x17b   : > { %5345 = vmatprep.mubr.bf16.mxu0 %v6432_v8  ;;  %5066 = vmatpush3.bf16.msra.mxu0 %v5773_v14 }
 0x17c   : > { %5067 = vmatprep.subr.bf16.mxu0 %v5777_v45 }
 0x17f   : > { %5068 = vmatpush3.bf16.msra.mxu0 %v5779_v53 }
 0x180   : > { %2062 = vmatmul.mubr.bf16.gmra.mrb[68].mxu1 %v6733_v2  ;;  %5361 = vmatprep.subr.bf16.mxu0 %v5782_v17 }
 0x181   : > { %2069 = vmatprep.mubr.bf16.mxu1 %v6731_v7 }
 0x182   : > { %5346 = vmatmul.mubr.bf16.gmra.mrb[32].mxu0 %v6453_v41 }
 0x183   : > { %5349 = vmatprep.mubr.bf16.mxu0 %v6509_v15 }
 0x188   : > { %2070 = vmatmul.mubr.bf16.gmra.mrb[72].mxu1 %v6749_v0 }
 0x189   : > { %2077 = vmatprep.mubr.bf16.mxu1 %v6747_v6 }
 0x18a   : > { %5350 = vmatmul.mubr.bf16.gmra.mrb[36].mxu0 %v6535_v34 }
 0x18b   : > { %5353 = vmatprep.mubr.bf16.mxu0 %v6577_v20 }
 0x190   : > { %2078 = vmatmul.mubr.bf16.gmra.mrb[76].mxu1 %v6760_v47 }
 0x191   : > { %2085 = vmatprep.mubr.bf16.mxu1 %v6757_v16 }
 0x192   : > { %5354 = vmatmul.mubr.bf16.gmra.mrb[40].mxu0 %v6593_v26 }
 0x193   : > { %5357 = vmatprep.mubr.bf16.mxu0 %v6624_v59 }
 0x198   : > { %2086 = vmatmul.mubr.bf16.gmra.mrb[80].mxu1 %v6772_v54 }
 0x199   : > { %2431 = vmatprep.mubr.bf16.mxu1 %v5879_v1 }
 0x19a   : > { %5358 = vmatmul.mubr.bf16.gmra.mrb[44].mxu0 %v6634_v5 }
 0x19b   : > { %3219 = vmatprep.mubr.bf16.mxu0 %v6158_v24 }
 0x1a0   : > { %2432 = vmatmul.mubr.bf16.vlgmr.msra.gmra.mrb[84].mxu1 %v6866_v50 }
 0x1a1   : > { %2439 = vmatprep.mubr.bf16.mxu1 %v6166_v30  ;;  %v5786_v30 = vld [vmem:[%s7356_s5 + $0x220] sm:$0xff]  }
 0x1a2   : > { %3220 = vmatmul.mubr.bf16.vlgmr.msra.gmra.mrb[48].mxu0 %v6206_v57 }
 0x1a3   : > { %5362 = vmatpush3.bf16.msra.mxu0 %v5782_v17  ;;  %3227 = vmatprep.mubr.bf16.mxu0 %v6237_v19 }
 0x1a4   : > { %5363 = vmatprep.subr.bf16.mxu0 %v5783_v52 }
 0x1a7   : > { %5364 = vmatpush3.bf16.msra.mxu0 %v5783_v52 }
 0x1a8   : > { %2440 = vmatmul.mubr.bf16.gmra.mrb[88].mxu1 %v6191_v44  ;;  %5365 = vmatprep.subr.bf16.mxu0 %v5784_v56  ;;  %v5787_v44 = vld [vmem:[%s7356_s5 + $0x228] sm:$0xff]  }
 0x1a9   : > { %2447 = vmatprep.mubr.bf16.mxu1 %v6158_v24  ;;  %v7409_v24 = vld [vmem:[#allocation6_spill] sm:$0xff] }
 0x1aa   : > { %3228 = vmatmul.mubr.bf16.gmra.mrb[52].mxu0 %v6284_v58 }
 0x1ab   : > { %3235 = vmatprep.mubr.bf16.mxu0 %v6228_v10  ;;  %5366 = vmatpush3.bf16.msra.mxu0 %v5784_v56 }
 0x1ac   : > { %5367 = vmatprep.subr.bf16.mxu0 %v5785_v60 }
 0x1af   : > { %5368 = vmatpush3.bf16.msra.mxu0 %v5785_v60  ;;  %v5792_v60 = vld [vmem:[%s7358_s7 + $0x10] sm:$0xff]  }
 0x1b0   : > { %2448 = vmatmul.mubr.bf16.gmra.mrb[92].mxu1 %v6206_v57  ;;  %5369 = vmatprep.subr.bf16.mxu0 %v5786_v30  ;;  %v5789_v57 = vld [vmem:[%s7356_s5 + $0x238] sm:$0xff]  }
 0x1b1   : > { %2455 = vmatprep.mubr.bf16.mxu1 %v6237_v19  ;;  %v7410_v19 = vld [vmem:[#allocation7_spill] sm:$0xff] }
 0x1b2   : > { %3236 = vmatmul.mubr.bf16.gmra.mrb[56].mxu0 %v6373_v62 }
 0x1b3   : > { %3243 = vmatprep.mubr.bf16.mxu0 %v7409_v24  ;;  %5370 = vmatpush3.bf16.msra.mxu0 %v5786_v30 }
 0x1b4   : > { %5371 = vmatprep.subr.bf16.mxu0 %v5787_v44 }
 0x1b7   : > { %5372 = vmatpush3.bf16.msra.mxu0 %v5787_v44 }
 0x1b8   : > { %2456 = vmatmul.mubr.bf16.gmra.mrb[96].mxu1 %v6284_v58  ;;  %5373 = vmatprep.subr.bf16.mxu0 %v5788_v32 }
 0x1b9   : > { %2463 = vmatprep.mubr.bf16.mxu1 %v6228_v10 }
 0x1ba   : > { %3244 = vmatmul.mubr.bf16.gmra.mrb[60].mxu0 %v7410_v19 }
 0x1bb   : > { %3251 = vmatprep.mubr.bf16.mxu0 %v7411_v63  ;;  %5374 = vmatpush3.bf16.msra.mxu0 %v5788_v32 }
 0x1bc   : > { %5375 = vmatprep.subr.bf16.mxu0 %v5789_v57 }
 0x1bf   : > { %5376 = vmatpush3.bf16.msra.mxu0 %v5789_v57 }
 0x1c0   : > { %2464 = vmatmul.mubr.bf16.gmra.mrb[100].mxu1 %v6373_v62 }
 0x1c1   : > { %2471 = vmatprep.mubr.bf16.mxu1 %v7409_v24 }
 0x1c2   : > { %3252 = vmatmul.mubr.bf16.gmra.mrb[64].mxu0 %v6551_v39 }
 0x1c3   : > { %3259 = vmatprep.mubr.bf16.mxu0 %v6560_v37 }
 0x1c8   : > { %2472 = vmatmul.mubr.bf16.gmra.mrb[104].mxu1 %v7410_v19 }
 0x1c9   : > { %2479 = vmatprep.mubr.bf16.mxu1 %v7411_v63 }
 0x1ca   : > { %3260 = vmatmul.mubr.bf16.gmra.mrb[68].mxu0 %v6607_v3 }
 0x1cb   : > { %3267 = vmatprep.mubr.bf16.mxu0 %v6602_v33 }
 0x1d0   : > { %2480 = vmatmul.mubr.bf16.gmra.mrb[108].mxu1 %v6551_v39 }
 0x1d1   : > { %2487 = vmatprep.mubr.bf16.mxu1 %v6560_v37 }
 0x1d2   : > { %3268 = vmatmul.mubr.bf16.gmra.mrb[72].mxu0 %v6631_v28 }
 0x1d3   : > { %3275 = vmatprep.mubr.bf16.mxu0 %v6638_v13 }
 0x1d8   : > { %2488 = vmatmul.mubr.bf16.gmra.mrb[112].mxu1 %v6607_v3 }
 0x1d9   : > { %2495 = vmatprep.mubr.bf16.mxu1 %v6602_v33 }
 0x1da   : > { %3276 = vmatmul.mubr.bf16.gmra.mrb[76].mxu0 %v6664_v51 }
 0x1db   : > { %3283 = vmatprep.mubr.bf16.mxu0 %v6661_v40 }
 0x1e0   : > { %2496 = vmatmul.mubr.bf16.gmra.mrb[116].mxu1 %v6631_v28 }
 0x1e1   : > { %2503 = vmatprep.mubr.bf16.mxu1 %v6638_v13 }
 0x1e2   : > { %3284 = vmatmul.mubr.bf16.gmra.mrb[80].mxu0 %v6682_v49 }
 0x1e3   : > { %3291 = vmatprep.mubr.bf16.mxu0 %v6679_v36 }
 0x1e8   : > { %2504 = vmatmul.mubr.bf16.gmra.mrb[120].mxu1 %v6664_v51 }
 0x1e9   : > { %2511 = vmatprep.mubr.bf16.mxu1 %v6661_v40 }
 0x1ea   : > { %3292 = vmatmul.mubr.bf16.gmra.mrb[84].mxu0 %v6699_v42 }
 0x1eb   : > { %3299 = vmatprep.mubr.bf16.mxu0 %v6697_v29 }
 0x1f0   : > { %2512 = vmatmul.mubr.bf16.gmra.mrb[124].mxu1 %v6682_v49  ;;  %v5790_v49 = vld [vmem:[%s7358_s7] sm:$0xff]  }
 0x1f1   : > { %2519 = vmatprep.mubr.bf16.mxu1 %v6679_v36  ;;  %5409 = vmatprep.subr.bf16.mxu1 %v5790_v49 }
 0x1f2   : > { %3300 = vmatmul.mubr.bf16.gmra.mrb[88].mxu0 %v6716_v31  ;;  %5410 = vmatpush3.bf16.msra.mxu1 %v5790_v49 }
 0x1f3   : > { %3307 = vmatprep.mubr.bf16.mxu0 %v6714_v12  ;;  %v4797_v10 = vpop.f32.mrb[20].mxu1 }
 0x1f4   : > { %v4798_v58 = vpop.f32.mrb[21].mxu1 }
 0x1f5   : > { %v6933_v62 = vadd.f32 %v4798_v58, %v4797_v10  ;;  %v4800_v37 = vpop.f32.mrb[22].mxu1  ;;  %v5793_v10 = vld [vmem:[%s7358_s7 + $0x18] sm:$0xff]  }
 0x1f6   : > { %v4801_v39 = vpop.f32.mrb[23].mxu1 }
 0x1f7   : > { %v6935_v33 = vadd.f32 %v4801_v39, %v4800_v37 }
 0x1f8   : > { %2520 = vmatmul.mubr.bf16.gmra.mrb[128].mxu1 %v6699_v42 }
 0x1f9   : > { %2527 = vmatprep.mubr.bf16.mxu1 %v6697_v29 }
 0x1fa   : > { %3308 = vmatmul.mubr.bf16.gmra.mrb[92].mxu0 %v6733_v2 }
 0x1fb   : > { %3315 = vmatprep.mubr.bf16.mxu0 %v6731_v7  ;;  %v4803_v3 = vpop.f32.mrb[24].mxu1 }
 0x1fc   : > { %v4804_v28 = vpop.f32.mrb[25].mxu1 }
 0x1fd   : > { %v6941_v13 = vadd.f32 %v4804_v28, %v4803_v3  ;;  %v4806_v40 = vpop.f32.mrb[26].mxu1 }
 0x1fe   : > { %v4807_v51 = vpop.f32.mrb[27].mxu1 }
 0x1ff   : > { %v6943_v36 = vadd.f32 %v4807_v51, %v4806_v40 }
 0x200   : > { %2528 = vmatmul.mubr.bf16.gmra.mrb[132].mxu1 %v6716_v31 }
 0x201   : > { %2535 = vmatprep.mubr.bf16.mxu1 %v6714_v12 }
 0x202   : > { %3316 = vmatmul.mubr.bf16.gmra.mrb[96].mxu0 %v6749_v0 }
 0x203   : > { %3323 = vmatprep.mubr.bf16.mxu0 %v6747_v6  ;;  %v4809_v29 = vpop.f32.mrb[28].mxu1 }
 0x204   : > { %v4810_v42 = vpop.f32.mrb[29].mxu1 }
 0x205   : > { %v6952_v25 = vadd.f32 %v4810_v42, %v4809_v29  ;;  %v4812_v61 = vpop.f32.mrb[30].mxu1  ;;  %v5794_v29 = vld [vmem:[%s7358_s7 + $0x20] sm:$0xff]  }
 0x206   : > { %v4813_v43 = vpop.f32.mrb[31].mxu1 }
 0x207   : > { %v6954_v18 = vadd.f32 %v4813_v43, %v4812_v61 }
 0x208   : > { %2536 = vmatmul.mubr.bf16.gmra.mrb[136].mxu1 %v6733_v2 }
 0x209   : > { %2543 = vmatprep.mubr.bf16.mxu1 %v6731_v7  ;;  %v5791_v7 = vld [vmem:[%s7358_s7 + $0x8] sm:$0xff]  }
 0x20a   : > { %3324 = vmatmul.mubr.bf16.gmra.mrb[100].mxu0 %v6760_v47  ;;  %5411 = vmatprep.subr.bf16.mxu1 %v5791_v7 }
 0x20b   : > { %3331 = vmatprep.mubr.bf16.mxu0 %v6757_v16  ;;  %v4815_v12 = vpop.f32.mrb[32].mxu1  ;;  %5412 = vmatpush3.bf16.msra.mxu1 %v5791_v7 }
 0x20c   : > { %v4816_v31 = vpop.f32.mrb[33].mxu1  ;;  %5413 = vmatprep.subr.bf16.mxu1 %v5792_v60 }
 0x20d   : > { %v6960_v11 = vadd.f32 %v4816_v31, %v4815_v12  ;;  %v4818_v22 = vpop.f32.mrb[34].mxu1 }
 0x20e   : > { %v4819_v55 = vpop.f32.mrb[35].mxu1 }
 0x20f   : > { %v6962_v48 = vadd.f32 %v4819_v55, %v4818_v22  ;;  %5414 = vmatpush3.bf16.msra.mxu1 %v5792_v60 }
 0x210   : > { %2544 = vmatmul.mubr.bf16.gmra.mrb[140].mxu1 %v6749_v0  ;;  %5415 = vmatprep.subr.bf16.mxu1 %v5793_v10 }
 0x211   : > { %2551 = vmatprep.mubr.bf16.mxu1 %v6747_v6 }
 0x212   : > { %3332 = vmatmul.mubr.bf16.gmra.mrb[104].mxu0 %v6772_v54 }
 0x213   : > { %v4821_v2 = vpop.f32.mrb[36].mxu1  ;;  %3339 = vmatprep.mubr.bf16.mxu0 %v5879_v1  ;;  %5416 = vmatpush3.bf16.msra.mxu1 %v5793_v10 }
 0x214   : > { %v4822_v16 = vpop.f32.mrb[37].mxu1  ;;  %5417 = vmatprep.subr.bf16.mxu1 %v5794_v29 }
 0x215   : > { %v6971_v14 = vadd.f32 %v4822_v16, %v4821_v2  ;;  %v4824_v45 = vpop.f32.mrb[38].mxu1  ;;  %v5795_v2 = vld [vmem:[%s7358_s7 + $0x28] sm:$0xff]  }
 0x216   : > { %v4825_v53 = vpop.f32.mrb[39].mxu1 }
 0x217   : > { %v6973_v17 = vadd.f32 %v4825_v53, %v4824_v45  ;;  %5418 = vmatpush3.bf16.msra.mxu1 %v5794_v29 }
 0x218   : > { %2552 = vmatmul.mubr.bf16.gmra.mrb[144].mxu1 %v6760_v47  ;;  %5419 = vmatprep.subr.bf16.mxu1 %v5795_v2 }
 0x21a   : > { %3340 = vmatmul.mubr.bf16.gmra.mrb[108].mxu0 %v6866_v50 }
 0x21b   : > { %5377 = vmatprep.mubr.bf16.mxu0 %v6180_v38  ;;  %v4827_v6 = vpop.f32.mrb[40].mxu1  ;;  %5420 = vmatpush3.bf16.msra.mxu1 %v5795_v2 }
 0x21c   : > { %v4828_v0 = vpop.f32.mrb[41].mxu1 }
 0x21d   : > { %v6978_v54 = vadd.f32 %v4828_v0, %v4827_v6  ;;  %v4830_v1 = vpop.f32.mrb[42].mxu1 }
 0x21e   : > { %v4831_v52 = vpop.f32.mrb[43].mxu1 }
 0x21f   : > { %v6980_v56 = vadd.f32 %v4831_v52, %v4830_v1 }
 0x222   : > { %5378 = vmatmul.mubr.bf16.vlgmr.msra.gmra.mrb[16].mxu0 %v6272_v46 }
 0x223   : > { %5381 = vmatprep.mubr.bf16.mxu0 %v6262_v35  ;;  %v4833_v47 = vpop.f32.mrb[44].mxu1 }
 0x224   : > { %v4834_v50 = vpop.f32.mrb[45].mxu1 }
 0x225   : > { %v6987_v38 = vadd.f32 %v4834_v50, %v4833_v47  ;;  %v4836_v30 = vpop.f32.mrb[46].mxu1 }
 0x226   : > { %v4837_v44 = vpop.f32.mrb[47].mxu1 }
 0x227   : > { %v6989_v24 = vadd.f32 %v4837_v44, %v4836_v30 }
 0x22a   : > { %5382 = vmatmul.mubr.bf16.gmra.mrb[20].mxu0 %v6361_v27 }
 0x22b   : > { %5385 = vmatprep.mubr.bf16.mxu0 %v6351_v4  ;;  %v4839_v32 = vpop.f32.mrb[48].mxu1 }
 0x22c   : > { %v4840_v57 = vpop.f32.mrb[49].mxu1 }
 0x22d   : > { %v6993_v19 = vadd.f32 %v4840_v57, %v4839_v32  ;;  %v4842_v46 = vpop.f32.mrb[50].mxu1 }
 0x22e   : > { %v4843_v35 = vpop.f32.mrb[51].mxu1 }
 0x22f   : > { %v6995_v63 = vadd.f32 %v4843_v35, %v4842_v46 }
 0x232   : > { %5386 = vmatmul.mubr.bf16.gmra.mrb[24].mxu0 %v6436_v21 }
 0x233   : > { %5389 = vmatprep.mubr.bf16.mxu0 %v6432_v8  ;;  %v4845_v58 = vpop.f32.mrb[52].mxu1 }
 0x234   : > { %v4846_v27 = vpop.f32.mrb[53].mxu1 }
 0x235   : > { %v7002_v4 = vadd.f32 %v4846_v27, %v4845_v58  ;;  %v4848_v37 = vpop.f32.mrb[54].mxu1 }
 0x236   : > { %v4849_v39 = vpop.f32.mrb[55].mxu1 }
 0x237   : > { %v7004_v3 = vadd.f32 %v4849_v39, %v4848_v37  ;;  %v5797_v39 = vld [vmem:[%s7358_s7 + $0x38] sm:$0xff]  }
 0x23a   : > { %5390 = vmatmul.mubr.bf16.gmra.mrb[28].mxu0 %v6453_v41 }
 0x23b   : > { %5393 = vmatprep.mubr.bf16.mxu0 %v6509_v15  ;;  %v4851_v28 = vpop.f32.mrb[56].mxu1 }
 0x23c   : > { %v4852_v40 = vpop.f32.mrb[57].mxu1 }
 0x23d   : > { %v7008_v51 = vadd.f32 %v4852_v40, %v4851_v28  ;;  %v4854_v21 = vpop.f32.mrb[58].mxu1 }
 0x23e   : > { %v4855_v8 = vpop.f32.mrb[59].mxu1 }
 0x23f   : > { %v7010_v49 = vadd.f32 %v4855_v8, %v4854_v21 }
 0x242   : > { %5394 = vmatmul.mubr.bf16.gmra.mrb[32].mxu0 %v6535_v34 }
 0x243   : > { %5397 = vmatprep.mubr.bf16.mxu0 %v6577_v20  ;;  %v4857_v42 = vpop.f32.mrb[60].mxu1 }
 0x244   : > { %v4858_v41 = vpop.f32.mrb[61].mxu1 }
 0x245   : > { %v7017_v15 = vadd.f32 %v4858_v41, %v4857_v42  ;;  %v4860_v61 = vpop.f32.mrb[62].mxu1 }
 0x246   : > { %v4861_v43 = vpop.f32.mrb[63].mxu1 }
 0x247   : > { %v7019_v12 = vadd.f32 %v4861_v43, %v4860_v61 }
 0x24a   : > { %5398 = vmatmul.mubr.bf16.gmra.mrb[36].mxu0 %v6593_v26 }
 0x24b   : > { %5401 = vmatprep.mubr.bf16.mxu0 %v6624_v59  ;;  %v4863_v31 = vpop.f32.mrb[64].mxu1 }
 0x24c   : > { %v4864_v22 = vpop.f32.mrb[65].mxu1 }
 0x24d   : > { %v7023_v55 = vadd.f32 %v4864_v22, %v4863_v31  ;;  %v4866_v34 = vpop.f32.mrb[66].mxu1 }
 0x24e   : > { %v4867_v20 = vpop.f32.mrb[67].mxu1 }
 0x24f   : > { %v7025_v7 = vadd.f32 %v4867_v20, %v4866_v34 }
 0x252   : > { %5402 = vmatmul.mubr.bf16.gmra.mrb[40].mxu0 %v6634_v5 }
 0x253   : > { %5405 = vmatprep.mubr.bf16.mxu0 %v6646_v23  ;;  %v4869_v16 = vpop.f32.mrb[68].mxu1  ;;  %v5796_v23 = vld [vmem:[%s7358_s7 + $0x30] sm:$0xff]  }
 0x254   : > { %v4870_v26 = vpop.f32.mrb[69].mxu1  ;;  %5421 = vmatprep.subr.bf16.mxu1 %v5796_v23 }
 0x255   : > { %v7032_v59 = vadd.f32 %v4870_v26, %v4869_v16  ;;  %v4872_v45 = vpop.f32.mrb[70].mxu1  ;;  %5422 = vmatpush3.bf16.msra.mxu1 %v5796_v23 }
 0x256   : > { %v4873_v53 = vpop.f32.mrb[71].mxu1  ;;  %5423 = vmatprep.subr.bf16.mxu1 %v5797_v39 }
 0x257   : > { %v7034_v6 = vadd.f32 %v4873_v53, %v4872_v45 }
 0x259   : > { %5424 = vmatpush3.bf16.msra.mxu1 %v5797_v39 }
 0x25a   : > { %5406 = vmatmul.mubr.bf16.gmra.mrb[44].mxu0 %v6778_v9 }
 0x25b   : > { %v4875_v0 = vpop.f32.mrb[72].mxu1 }
 0x25c   : > { %v4876_v1 = vpop.f32.mrb[73].mxu1 }
 0x25d   : > { %v7037_v52 = vadd.f32 %v4876_v1, %v4875_v0  ;;  %v4878_v60 = vpop.f32.mrb[74].mxu1 }
 0x25e   : > { %v4879_v5 = vpop.f32.mrb[75].mxu1 }
 0x25f   : > { %v7039_v47 = vadd.f32 %v4879_v5, %v4878_v60 }
 0x263   : > { %v4881_v50 = vpop.f32.mrb[76].mxu1 }
 0x264   : > { %v4882_v30 = vpop.f32.mrb[77].mxu1 }
 0x265   : > { %v7044_v44 = vadd.f32 %v4882_v30, %v4881_v50  ;;  %v4884_v32 = vpop.f32.mrb[78].mxu1 }
 0x266   : > { %v4885_v9 = vpop.f32.mrb[79].mxu1 }
 0x267   : > { %v7046_v57 = vadd.f32 %v4885_v9, %v4884_v32 }
 0x26b   : > { %v4887_v46 = vpop.f32.mrb[80].mxu1 }
 0x26c   : > { %v4888_v35 = vpop.f32.mrb[81].mxu1 }
 0x26d   : > { %v7048_v10 = vadd.f32 %v4888_v35, %v4887_v46  ;;  %v4890_v58 = vpop.f32.mrb[82].mxu1 }
 0x26e   : > { %v4891_v27 = vpop.f32.mrb[83].mxu1 }
 0x26f   : > { %v7050_v37 = vadd.f32 %v4891_v27, %v4890_v58 }
 0x273   : > { %v4933_v28 = vpop.f32.mrb[84].mxu1 }
 0x274   : > { %v4934_v40 = vpop.f32.mrb[85].mxu1 }
 0x275   : > { %v4935_v21 = vadd.f32 %v4934_v40, %v4933_v28  ;;  %v5069_v8 = vpop.f32.mrb[48].mxu0  ;;  %v4936_v29 = vpop.f32.mrb[86].mxu1 }
 0x276   : > { %v5070_v42 = vpop.f32.mrb[49].mxu0  ;;  %v4937_v41 = vpop.f32.mrb[87].mxu1 }
 0x277   : > { %v5476_v61 = vadd.f32 %v4935_v21, %v6933_v62  ;;  %v5071_v43 = vadd.f32 %v5070_v42, %v5069_v8  ;;  %v4938_v31 = vadd.f32 %v4937_v41, %v4936_v29  ;;  %v5072_v22 = vpop.f32.mrb[50].mxu0 }
 0x278   : > { %v5073_v34 = vpop.f32.mrb[51].mxu0 }
 0x279   : > { %v5482_v20 = vadd.f32 %v4938_v31, %v6935_v33  ;;  %v5074_v2 = vadd.f32 %v5073_v34, %v5072_v22  ;;  %v7057_v16 = vadd.f32 %v5476_v61, %v5071_v43 }
 0x27b   : > { %v4939_v26 = vpop.f32.mrb[88].mxu1  ;;  %v7059_v45 = vadd.f32 %v5482_v20, %v5074_v2 }
 0x27c   : > { %v4940_v53 = vpop.f32.mrb[89].mxu1 }
 0x27d   : > { %v4941_v0 = vadd.f32 %v4940_v53, %v4939_v26  ;;  %v5075_v1 = vpop.f32.mrb[52].mxu0  ;;  %v4942_v60 = vpop.f32.mrb[90].mxu1 }
 0x27e   : > { %v5076_v5 = vpop.f32.mrb[53].mxu0  ;;  %v4943_v23 = vpop.f32.mrb[91].mxu1 }
 0x27f   : > { %v5473_v62 = vadd.f32 %v4941_v0, %v6941_v13  ;;  %v5077_v50 = vadd.f32 %v5076_v5, %v5075_v1  ;;  %v4944_v30 = vadd.f32 %v4943_v23, %v4942_v60  ;;  %v5078_v32 = vpop.f32.mrb[54].mxu0 }
 0x280   : > { %v5079_v9 = vpop.f32.mrb[55].mxu0 }
 0x281   : > { %v5479_v33 = vadd.f32 %v4944_v30, %v6943_v36  ;;  %v5080_v46 = vadd.f32 %v5079_v9, %v5078_v32  ;;  %v7063_v35 = vadd.f32 %v5473_v62, %v5077_v50 }
 0x283   : > { %v4945_v58 = vpop.f32.mrb[92].mxu1  ;;  %v7065_v27 = vadd.f32 %v5479_v33, %v5080_v46 }
 0x284   : > { %v4946_v39 = vpop.f32.mrb[93].mxu1 }
 0x285   : > { %v4947_v28 = vadd.f32 %v4946_v39, %v4945_v58  ;;  %v5081_v40 = vpop.f32.mrb[56].mxu0  ;;  %v4948_v21 = vpop.f32.mrb[94].mxu1 }
 0x286   : > { %v5082_v8 = vpop.f32.mrb[57].mxu0  ;;  %v4949_v29 = vpop.f32.mrb[95].mxu1 }
 0x287   : > { %v5488_v13 = vadd.f32 %v4947_v28, %v6952_v25  ;;  %v5083_v42 = vadd.f32 %v5082_v8, %v5081_v40  ;;  %v4950_v41 = vadd.f32 %v4949_v29, %v4948_v21  ;;  %v5084_v61 = vpop.f32.mrb[58].mxu0 }
 0x288   : > { %v5085_v43 = vpop.f32.mrb[59].mxu0 }
 0x289   : > { %v5494_v36 = vadd.f32 %v4950_v41, %v6954_v18  ;;  %v5086_v31 = vadd.f32 %v5085_v43, %v5084_v61  ;;  %v7069_v22 = vadd.f32 %v5488_v13, %v5083_v42 }
 0x28b   : > { %v4951_v34 = vpop.f32.mrb[96].mxu1  ;;  %v7071_v20 = vadd.f32 %v5494_v36, %v5086_v31 }
 0x28c   : > { %v4952_v2 = vpop.f32.mrb[97].mxu1 }
 0x28d   : > { %v4953_v26 = vadd.f32 %v4952_v2, %v4951_v34  ;;  %v5087_v53 = vpop.f32.mrb[60].mxu0  ;;  %v4954_v0 = vpop.f32.mrb[98].mxu1 }
 0x28e   : > { %v5088_v1 = vpop.f32.mrb[61].mxu0  ;;  %v4955_v60 = vpop.f32.mrb[99].mxu1 }
 0x28f   : > { %v5485_v25 = vadd.f32 %v4953_v26, %v6960_v11  ;;  %v5089_v5 = vadd.f32 %v5088_v1, %v5087_v53  ;;  %v4956_v23 = vadd.f32 %v4955_v60, %v4954_v0  ;;  %v5090_v62 = vpop.f32.mrb[62].mxu0 }
 0x290   : > { %v5091_v50 = vpop.f32.mrb[63].mxu0 }
 0x291   : > { %v5491_v18 = vadd.f32 %v4956_v23, %v6962_v48  ;;  %v5092_v30 = vadd.f32 %v5091_v50, %v5090_v62  ;;  %v7075_v32 = vadd.f32 %v5485_v25, %v5089_v5 }
 0x293   : > { %v4957_v9 = vpop.f32.mrb[100].mxu1  ;;  %v7077_v33 = vadd.f32 %v5491_v18, %v5092_v30 }
 0x294   : > { %v4958_v46 = vpop.f32.mrb[101].mxu1 }
 0x295   : > { %v4959_v58 = vadd.f32 %v4958_v46, %v4957_v9  ;;  %v5093_v39 = vpop.f32.mrb[64].mxu0  ;;  %v4960_v28 = vpop.f32.mrb[102].mxu1 }
 0x296   : > { %v5094_v40 = vpop.f32.mrb[65].mxu0  ;;  %v4961_v21 = vpop.f32.mrb[103].mxu1 }
 0x297   : > { %v5500_v11 = vadd.f32 %v4959_v58, %v6971_v14  ;;  %v5095_v8 = vadd.f32 %v5094_v40, %v5093_v39  ;;  %v4962_v29 = vadd.f32 %v4961_v21, %v4960_v28  ;;  %v5096_v13 = vpop.f32.mrb[66].mxu0 }
 0x298   : > { %v5097_v42 = vpop.f32.mrb[67].mxu0 }
 0x299   : > { %v5506_v48 = vadd.f32 %v4962_v29, %v6973_v17  ;;  %v5098_v41 = vadd.f32 %v5097_v42, %v5096_v13  ;;  %v7081_v61 = vadd.f32 %v5500_v11, %v5095_v8 }
 0x29b   : > { %v4963_v43 = vpop.f32.mrb[104].mxu1  ;;  %v7083_v36 = vadd.f32 %v5506_v48, %v5098_v41 }
 0x29c   : > { %v4964_v31 = vpop.f32.mrb[105].mxu1 }
 0x29d   : > { %v4965_v34 = vadd.f32 %v4964_v31, %v4963_v43  ;;  %v5099_v2 = vpop.f32.mrb[68].mxu0  ;;  %v4966_v26 = vpop.f32.mrb[106].mxu1 }
 0x29e   : > { %v5100_v53 = vpop.f32.mrb[69].mxu0  ;;  %v4967_v0 = vpop.f32.mrb[107].mxu1 }
 0x29f   : > { %v5497_v14 = vadd.f32 %v4965_v34, %v6978_v54  ;;  %v5101_v1 = vadd.f32 %v5100_v53, %v5099_v2  ;;  %v4968_v60 = vadd.f32 %v4967_v0, %v4966_v26  ;;  %v5102_v25 = vpop.f32.mrb[70].mxu0 }
 0x2a0   : > { %v5103_v5 = vpop.f32.mrb[71].mxu0 }
 0x2a1   : > { %v5503_v17 = vadd.f32 %v4968_v60, %v6980_v56  ;;  %v5104_v23 = vadd.f32 %v5103_v5, %v5102_v25  ;;  %v7087_v62 = vadd.f32 %v5497_v14, %v5101_v1 }
 0x2a3   : > { %v4969_v50 = vpop.f32.mrb[108].mxu1  ;;  %v7089_v18 = vadd.f32 %v5503_v17, %v5104_v23 }
 0x2a4   : > { %v4970_v30 = vpop.f32.mrb[109].mxu1 }
 0x2a5   : > { %v4971_v9 = vadd.f32 %v4970_v30, %v4969_v50  ;;  %v5105_v46 = vpop.f32.mrb[72].mxu0  ;;  %v4972_v58 = vpop.f32.mrb[110].mxu1 }
 0x2a6   : > { %v5106_v39 = vpop.f32.mrb[73].mxu0  ;;  %v4973_v28 = vpop.f32.mrb[111].mxu1 }
 0x2a7   : > { %v5512_v54 = vadd.f32 %v4971_v9, %v6987_v38  ;;  %v5107_v40 = vadd.f32 %v5106_v39, %v5105_v46  ;;  %v4974_v21 = vadd.f32 %v4973_v28, %v4972_v58  ;;  %v5108_v11 = vpop.f32.mrb[74].mxu0 }
 0x2a8   : > { %v5109_v8 = vpop.f32.mrb[75].mxu0 }
 0x2a9   : > { %v5518_v56 = vadd.f32 %v4974_v21, %v6989_v24  ;;  %v5110_v29 = vadd.f32 %v5109_v8, %v5108_v11  ;;  %v7093_v13 = vadd.f32 %v5512_v54, %v5107_v40 }
 0x2ab   : > { %v4975_v42 = vpop.f32.mrb[112].mxu1  ;;  %v7095_v48 = vadd.f32 %v5518_v56, %v5110_v29 }
 0x2ac   : > { %v4976_v41 = vpop.f32.mrb[113].mxu1 }
 0x2ad   : > { %v4977_v43 = vadd.f32 %v4976_v41, %v4975_v42  ;;  %v5111_v31 = vpop.f32.mrb[76].mxu0  ;;  %v4978_v34 = vpop.f32.mrb[114].mxu1 }
 0x2ae   : > { %v5112_v2 = vpop.f32.mrb[77].mxu0  ;;  %v4979_v26 = vpop.f32.mrb[115].mxu1 }
 0x2af   : > { %v5509_v38 = vadd.f32 %v4977_v43, %v6993_v19  ;;  %v5113_v53 = vadd.f32 %v5112_v2, %v5111_v31  ;;  %v4980_v0 = vadd.f32 %v4979_v26, %v4978_v34  ;;  %v5114_v14 = vpop.f32.mrb[78].mxu0 }
 0x2b0   : > { %v5115_v1 = vpop.f32.mrb[79].mxu0 }
 0x2b1   : > { %v5515_v24 = vadd.f32 %v4980_v0, %v6995_v63  ;;  %v5116_v60 = vadd.f32 %v5115_v1, %v5114_v14  ;;  %v7099_v25 = vadd.f32 %v5509_v38, %v5113_v53 }
 0x2b3   : > { %v4981_v5 = vpop.f32.mrb[116].mxu1  ;;  %v7101_v17 = vadd.f32 %v5515_v24, %v5116_v60 }
 0x2b4   : > { %v4982_v23 = vpop.f32.mrb[117].mxu1 }
 0x2b5   : > { %v4983_v50 = vadd.f32 %v4982_v23, %v4981_v5  ;;  %v5117_v30 = vpop.f32.mrb[80].mxu0  ;;  %v4984_v9 = vpop.f32.mrb[118].mxu1 }
 0x2b6   : > { %v5118_v46 = vpop.f32.mrb[81].mxu0  ;;  %v4985_v58 = vpop.f32.mrb[119].mxu1 }
 0x2b7   : > { %v5524_v19 = vadd.f32 %v4983_v50, %v7002_v4  ;;  %v5119_v39 = vadd.f32 %v5118_v46, %v5117_v30  ;;  %v4986_v28 = vadd.f32 %v4985_v58, %v4984_v9  ;;  %v5120_v54 = vpop.f32.mrb[82].mxu0 }
 0x2b8   : > { %v5121_v40 = vpop.f32.mrb[83].mxu0 }
 0x2b9   : > { %v5530_v63 = vadd.f32 %v4986_v28, %v7004_v3  ;;  %v5122_v21 = vadd.f32 %v5121_v40, %v5120_v54  ;;  %v7105_v11 = vadd.f32 %v5524_v19, %v5119_v39 }
 0x2bb   : > { %v4987_v8 = vpop.f32.mrb[120].mxu1  ;;  %v7107_v56 = vadd.f32 %v5530_v63, %v5122_v21 }
 0x2bc   : > { %v4988_v29 = vpop.f32.mrb[121].mxu1 }
 0x2bd   : > { %v4989_v42 = vadd.f32 %v4988_v29, %v4987_v8  ;;  %v5123_v41 = vpop.f32.mrb[84].mxu0  ;;  %v4990_v43 = vpop.f32.mrb[122].mxu1 }
 0x2be   : > { %v5124_v31 = vpop.f32.mrb[85].mxu0  ;;  %v4991_v34 = vpop.f32.mrb[123].mxu1 }
 0x2bf   : > { %v5521_v4 = vadd.f32 %v4989_v42, %v7008_v51  ;;  %v5125_v2 = vadd.f32 %v5124_v31, %v5123_v41  ;;  %v4992_v26 = vadd.f32 %v4991_v34, %v4990_v43  ;;  %v5126_v38 = vpop.f32.mrb[86].mxu0 }
 0x2c0   : > { %v5127_v53 = vpop.f32.mrb[87].mxu0 }
 0x2c1   : > { %v5527_v3 = vadd.f32 %v4992_v26, %v7010_v49  ;;  %v5128_v0 = vadd.f32 %v5127_v53, %v5126_v38  ;;  %v7111_v14 = vadd.f32 %v5521_v4, %v5125_v2 }
 0x2c3   : > { %v4993_v1 = vpop.f32.mrb[124].mxu1  ;;  %v7113_v24 = vadd.f32 %v5527_v3, %v5128_v0 }
 0x2c4   : > { %v4994_v60 = vpop.f32.mrb[125].mxu1 }
 0x2c5   : > { %v4995_v5 = vadd.f32 %v4994_v60, %v4993_v1  ;;  %v5129_v23 = vpop.f32.mrb[88].mxu0  ;;  %v4996_v50 = vpop.f32.mrb[126].mxu1 }
 0x2c6   : > { %v5130_v30 = vpop.f32.mrb[89].mxu0  ;;  %v4997_v9 = vpop.f32.mrb[127].mxu1 }
 0x2c7   : > { %v5536_v51 = vadd.f32 %v4995_v5, %v7017_v15  ;;  %v5131_v46 = vadd.f32 %v5130_v30, %v5129_v23  ;;  %v4998_v58 = vadd.f32 %v4997_v9, %v4996_v50  ;;  %v5132_v19 = vpop.f32.mrb[90].mxu0 }
 0x2c8   : > { %v5133_v39 = vpop.f32.mrb[91].mxu0 }
 0x2c9   : > { %v5542_v49 = vadd.f32 %v4998_v58, %v7019_v12  ;;  %v5134_v28 = vadd.f32 %v5133_v39, %v5132_v19  ;;  %v7117_v54 = vadd.f32 %v5536_v51, %v5131_v46 }
 0x2cb   : > { %v4999_v40 = vpop.f32.mrb[128].mxu1  ;;  %v7119_v63 = vadd.f32 %v5542_v49, %v5134_v28 }
 0x2cc   : > { %v5000_v21 = vpop.f32.mrb[129].mxu1 }
 0x2cd   : > { %v5001_v8 = vadd.f32 %v5000_v21, %v4999_v40  ;;  %v5135_v29 = vpop.f32.mrb[92].mxu0  ;;  %v5002_v42 = vpop.f32.mrb[130].mxu1 }
 0x2ce   : > { %v5136_v41 = vpop.f32.mrb[93].mxu0  ;;  %v5003_v43 = vpop.f32.mrb[131].mxu1 }
 0x2cf   : > { %v5533_v15 = vadd.f32 %v5001_v8, %v7023_v55  ;;  %v5137_v31 = vadd.f32 %v5136_v41, %v5135_v29  ;;  %v5004_v34 = vadd.f32 %v5003_v43, %v5002_v42  ;;  %v5138_v4 = vpop.f32.mrb[94].mxu0 }
 0x2d0   : > { %v5139_v2 = vpop.f32.mrb[95].mxu0 }
 0x2d1   : > { %v5539_v12 = vadd.f32 %v5004_v34, %v7025_v7  ;;  %v5140_v26 = vadd.f32 %v5139_v2, %v5138_v4  ;;  %v7123_v38 = vadd.f32 %v5533_v15, %v5137_v31 }
 0x2d3   : > { %v5005_v53 = vpop.f32.mrb[132].mxu1  ;;  %v7125_v3 = vadd.f32 %v5539_v12, %v5140_v26 }
 0x2d4   : > { %v5006_v0 = vpop.f32.mrb[133].mxu1 }
 0x2d5   : > { %v5007_v1 = vadd.f32 %v5006_v0, %v5005_v53  ;;  %v5141_v60 = vpop.f32.mrb[96].mxu0  ;;  %v5008_v5 = vpop.f32.mrb[134].mxu1 }
 0x2d6   : > { %v5142_v23 = vpop.f32.mrb[97].mxu0  ;;  %v5009_v50 = vpop.f32.mrb[135].mxu1 }
 0x2d7   : > { %v5548_v55 = vadd.f32 %v5007_v1, %v7032_v59  ;;  %v5143_v30 = vadd.f32 %v5142_v23, %v5141_v60  ;;  %v5010_v9 = vadd.f32 %v5009_v50, %v5008_v5  ;;  %v5144_v51 = vpop.f32.mrb[98].mxu0 }
 0x2d8   : > { %v5145_v46 = vpop.f32.mrb[99].mxu0 }
 0x2d9   : > { %v5554_v7 = vadd.f32 %v5010_v9, %v7034_v6  ;;  %v5146_v58 = vadd.f32 %v5145_v46, %v5144_v51  ;;  %v7129_v19 = vadd.f32 %v5548_v55, %v5143_v30 }
 0x2db   : > { %v5011_v39 = vpop.f32.mrb[136].mxu1  ;;  %v7131_v49 = vadd.f32 %v5554_v7, %v5146_v58 }
 0x2dc   : > { %v5012_v28 = vpop.f32.mrb[137].mxu1 }
 0x2dd   : > { %v5013_v40 = vadd.f32 %v5012_v28, %v5011_v39  ;;  %v5147_v21 = vpop.f32.mrb[100].mxu0  ;;  %v5014_v8 = vpop.f32.mrb[138].mxu1 }
 0x2de   : > { %v5148_v29 = vpop.f32.mrb[101].mxu0  ;;  %v5015_v42 = vpop.f32.mrb[139].mxu1 }
 0x2df   : > { %v5545_v59 = vadd.f32 %v5013_v40, %v7037_v52  ;;  %v5149_v41 = vadd.f32 %v5148_v29, %v5147_v21  ;;  %v5016_v43 = vadd.f32 %v5015_v42, %v5014_v8  ;;  %v5150_v15 = vpop.f32.mrb[102].mxu0 }
 0x2e0   : > { %v5151_v31 = vpop.f32.mrb[103].mxu0 }
 0x2e1   : > { %v5551_v6 = vadd.f32 %v5016_v43, %v7039_v47  ;;  %v5152_v34 = vadd.f32 %v5151_v31, %v5150_v15  ;;  %v7135_v4 = vadd.f32 %v5545_v59, %v5149_v41 }
 0x2e3   : > { %v5017_v2 = vpop.f32.mrb[140].mxu1  ;;  %v7137_v12 = vadd.f32 %v5551_v6, %v5152_v34  ;;  %v7154_v34 = vld [vmem:[%s7357_s6] ss:$0 sm:$0xff] }
 0x2e4   : > { %v5018_v26 = vpop.f32.mrb[141].mxu1 }
 0x2e5   : > { %v5019_v53 = vadd.f32 %v5018_v26, %v5017_v2  ;;  %v5153_v0 = vpop.f32.mrb[104].mxu0  ;;  %v5020_v1 = vpop.f32.mrb[142].mxu1 }
 0x2e6   : > { %v5154_v60 = vpop.f32.mrb[105].mxu0  ;;  %v5021_v5 = vpop.f32.mrb[143].mxu1 }
 0x2e7   : > { %v5560_v52 = vadd.f32 %v5019_v53, %v7044_v44  ;;  %v5155_v23 = vadd.f32 %v5154_v60, %v5153_v0  ;;  %v5022_v50 = vadd.f32 %v5021_v5, %v5020_v1  ;;  %v5156_v55 = vpop.f32.mrb[106].mxu0 }
 0x2e8   : > { %v5157_v30 = vpop.f32.mrb[107].mxu0 }
 0x2e9   : > { %v5566_v47 = vadd.f32 %v5022_v50, %v7046_v57  ;;  %v5158_v9 = vadd.f32 %v5157_v30, %v5156_v55  ;;  %v7141_v51 = vadd.f32 %v5560_v52, %v5155_v23 }
 0x2eb   : > { %v5023_v46 = vpop.f32.mrb[144].mxu1  ;;  %v7143_v7 = vadd.f32 %v5566_v47, %v5158_v9 }
 0x2ec   : > { %v5024_v58 = vpop.f32.mrb[145].mxu1 }
 0x2ed   : > { %v5025_v39 = vadd.f32 %v5024_v58, %v5023_v46  ;;  %v5159_v28 = vpop.f32.mrb[108].mxu0  ;;  %v5026_v40 = vpop.f32.mrb[146].mxu1 }
 0x2ee   : > { %v5160_v21 = vpop.f32.mrb[109].mxu0  ;;  %v5027_v8 = vpop.f32.mrb[147].mxu1 }
 0x2ef   : > { %v5557_v44 = vadd.f32 %v5025_v39, %v7048_v10  ;;  %v5161_v29 = vadd.f32 %v5160_v21, %v5159_v28  ;;  %v5028_v42 = vadd.f32 %v5027_v8, %v5026_v40  ;;  %v5162_v59 = vpop.f32.mrb[110].mxu0 }
 0x2f0   : > { %v5163_v41 = vpop.f32.mrb[111].mxu0 }
 0x2f1   : > { %v5563_v57 = vadd.f32 %v5028_v42, %v7050_v37  ;;  %v5164_v43 = vadd.f32 %v5163_v41, %v5162_v59  ;;  %v7147_v15 = vadd.f32 %v5557_v44, %v5161_v29 }
 0x2f3   : > { %v7149_v31 = vadd.f32 %v5563_v57, %v5164_v43 }
 0x2f5   : > { %v5379_v6 = vpop.f32.mrb[16].mxu0 }
 0x2f6   : > { %v5475_v2 = vadd.f32 %v7063_v35, %v5379_v6  ;;  %v3382_v10 = vpop.f32.mrb[17].mxu0 }
 0x2f7   : > { %v5478_v26 = vadd.f32 %v7057_v16, %v3382_v10  ;;  %v5380_v53 = vpop.f32.mrb[18].mxu0 }
 0x2f8   : > { %v3550_v0 = vadd.f32 %v5475_v2, %v7154_v34  ;;  %v5481_v37 = vadd.f32 %v7065_v27, %v5380_v53  ;;  %v3385_v1 = vpop.f32.mrb[19].mxu0 }
 0x2f9   : > { %v3548_v60 = vadd.f32 %v5478_v26, %v7154_v34  ;;  %v5484_v5 = vadd.f32 %v7059_v45, %v3385_v1 }
 0x2fa   : > { %v3551_v52 = vadd.f32 %v5481_v37, %v7154_v34  ;;  %v3582_v50 = vmax.f32 %v3550_v0, 0.0 }
 0x2fb   : > { %v3549_v23 = vadd.f32 %v5484_v5, %v7154_v34  ;;  %v3580_v35 = vmax.f32 %v3548_v60, 0.0 }
 0x2fc   : > { %v3583_v55 = vmax.f32 %v3551_v52, 0.0 }
 0x2fd   : > { %v3581_v30 = vmax.f32 %v3549_v23, 0.0  ;;  %v5383_v47 = vpop.f32.mrb[20].mxu0 }
 0x2fe   : > { %v3613_v16 = vpack.c.bf16 %v3583_v55, %v3582_v50  ;;  %v5487_v9 = vadd.f32 %v7075_v32, %v5383_v47  ;;  %v3398_v46 = vpop.f32.mrb[21].mxu0 }
 0x2ff   : > { %v5490_v27 = vadd.f32 %v7069_v22, %v3398_v46  ;;  %v5384_v58 = vpop.f32.mrb[22].mxu0  ;;  %v3612_v39 = vpack.c.bf16 %v3581_v30, %v3580_v35 }
 0x300   : > { %v3554_v28 = vadd.f32 %v5487_v9, %v7154_v34  ;;  %v5493_v45 = vadd.f32 %v7077_v33, %v5384_v58  ;;  %v3401_v40 = vpop.f32.mrb[23].mxu0 }
 0x301   : > { %v3552_v21 = vadd.f32 %v5490_v27, %v7154_v34  ;;  %v5496_v8 = vadd.f32 %v7071_v20, %v3401_v40  ;;  %5425 = vmatprep.mubr.bf16.mxu1 %v3612_v39 }
 0x302   : > { %v3555_v44 = vadd.f32 %v5493_v45, %v7154_v34  ;;  %5426 = vmatmul.mubr.bf16.vlgmr.msra.gmra.mrb[148].mxu1 %v3613_v16  ;;  %v3586_v29 = vmax.f32 %v3554_v28, 0.0 }
 0x303   : > { %v3553_v32 = vadd.f32 %v5496_v8, %v7154_v34  ;;  %v3584_v22 = vmax.f32 %v3552_v21, 0.0 }
 0x304   : > { %v3587_v42 = vmax.f32 %v3555_v44, 0.0 }
 0x305   : > { %v3585_v59 = vmax.f32 %v3553_v32, 0.0  ;;  %v5387_v41 = vpop.f32.mrb[24].mxu0 }
 0x306   : > { %v5499_v57 = vadd.f32 %v7087_v62, %v5387_v41  ;;  %v3414_v43 = vpop.f32.mrb[25].mxu0  ;;  %v3615_v33 = vpack.c.bf16 %v3587_v42, %v3586_v29 }
 0x307   : > { %v5502_v6 = vadd.f32 %v7081_v61, %v3414_v43  ;;  %v5388_v2 = vpop.f32.mrb[26].mxu0  ;;  %v3614_v10 = vpack.c.bf16 %v3585_v59, %v3584_v22 }
 0x308   : > { %v3558_v20 = vadd.f32 %v5499_v57, %v7154_v34  ;;  %v5505_v26 = vadd.f32 %v7089_v18, %v5388_v2  ;;  %v3417_v53 = vpop.f32.mrb[27].mxu0 }
 0x309   : > { %v3556_v0 = vadd.f32 %v5502_v6, %v7154_v34  ;;  %v5508_v37 = vadd.f32 %v7083_v36, %v3417_v53  ;;  %5429 = vmatprep.mubr.bf16.mxu1 %v3614_v10 }
 0x30a   : > { %v3559_v1 = vadd.f32 %v5505_v26, %v7154_v34  ;;  %5430 = vmatmul.mubr.bf16.gmra.mrb[152].mxu1 %v3615_v33  ;;  %v3590_v60 = vmax.f32 %v3558_v20, 0.0 }
 0x30b   : > { %v3557_v62 = vadd.f32 %v5508_v37, %v7154_v34  ;;  %v3588_v61 = vmax.f32 %v3556_v0, 0.0 }
 0x30c   : > { %v3591_v5 = vmax.f32 %v3559_v1, 0.0 }
 0x30d   : > { %v3589_v52 = vmax.f32 %v3557_v62, 0.0  ;;  %v5391_v23 = vpop.f32.mrb[28].mxu0 }
 0x30e   : > { %v5511_v50 = vadd.f32 %v7099_v25, %v5391_v23  ;;  %v3430_v55 = vpop.f32.mrb[29].mxu0  ;;  %v3617_v18 = vpack.c.bf16 %v3591_v5, %v3590_v60 }
 0x30f   : > { %v5514_v35 = vadd.f32 %v7093_v13, %v3430_v55  ;;  %v5392_v30 = vpop.f32.mrb[30].mxu0  ;;  %v3616_v47 = vpack.c.bf16 %v3589_v52, %v3588_v61 }
 0x310   : > { %v3562_v36 = vadd.f32 %v5511_v50, %v7154_v34  ;;  %v5517_v16 = vadd.f32 %v7101_v17, %v5392_v30  ;;  %v3433_v9 = vpop.f32.mrb[31].mxu0 }
 0x311   : > { %v3560_v46 = vadd.f32 %v5514_v35, %v7154_v34  ;;  %v5520_v27 = vadd.f32 %v7095_v48, %v3433_v9  ;;  %5433 = vmatprep.mubr.bf16.mxu1 %v3616_v47 }
 0x312   : > { %v3563_v58 = vadd.f32 %v5517_v16, %v7154_v34  ;;  %5434 = vmatmul.mubr.bf16.gmra.mrb[156].mxu1 %v3617_v18  ;;  %v3594_v39 = vmax.f32 %v3562_v36, 0.0 }
 0x313   : > { %v3561_v25 = vadd.f32 %v5520_v27, %v7154_v34  ;;  %v3592_v13 = vmax.f32 %v3560_v46, 0.0 }
 0x314   : > { %v3595_v28 = vmax.f32 %v3563_v58, 0.0 }
 0x315   : > { %v3593_v45 = vmax.f32 %v3561_v25, 0.0  ;;  %v5395_v40 = vpop.f32.mrb[32].mxu0 }
 0x316   : > { %v5523_v21 = vadd.f32 %v7111_v14, %v5395_v40  ;;  %v3446_v8 = vpop.f32.mrb[33].mxu0  ;;  %v3619_v17 = vpack.c.bf16 %v3595_v28, %v3594_v39 }
 0x317   : > { %v5526_v44 = vadd.f32 %v7105_v11, %v3446_v8  ;;  %v5396_v32 = vpop.f32.mrb[34].mxu0  ;;  %v3618_v29 = vpack.c.bf16 %v3593_v45, %v3592_v13 }
 0x318   : > { %v3566_v48 = vadd.f32 %v5523_v21, %v7154_v34  ;;  %v5529_v42 = vadd.f32 %v7113_v24, %v5396_v32  ;;  %v3449_v22 = vpop.f32.mrb[35].mxu0 }
 0x319   : > { %v3564_v59 = vadd.f32 %v5526_v44, %v7154_v34  ;;  %v5532_v41 = vadd.f32 %v7107_v56, %v3449_v22  ;;  %5437 = vmatprep.mubr.bf16.mxu1 %v3618_v29 }
 0x31a   : > { %v3567_v57 = vadd.f32 %v5529_v42, %v7154_v34  ;;  %5438 = vmatmul.mubr.bf16.gmra.mrb[160].mxu1 %v3619_v17  ;;  %v3598_v43 = vmax.f32 %v3566_v48, 0.0 }
 0x31b   : > { %v3565_v14 = vadd.f32 %v5532_v41, %v7154_v34  ;;  %v3596_v11 = vmax.f32 %v3564_v59, 0.0 }
 0x31c   : > { %v3599_v33 = vmax.f32 %v3567_v57, 0.0  ;;  %v4725_v57 = vld [vmem:[%s6005_s20 + $0x8] sm:$0xff]  }
 0x31d   : > { %v3597_v6 = vmax.f32 %v3565_v14, 0.0  ;;  %v5399_v2 = vpop.f32.mrb[36].mxu0  ;;  %v4581_v14 = vld [vmem:[%s6005_s20] sm:$0xff]  }
 0x31e   : > { %v5535_v10 = vadd.f32 %v7123_v38, %v5399_v2  ;;  %v3462_v20 = vpop.f32.mrb[37].mxu0  ;;  %v3621_v24 = vpack.c.bf16 %v3599_v33, %v3598_v43  ;;  %v4586_v43 = vunpack.c.l.bf16 %v4725_v57  ;;  %v4582_v33 = vunpack.c.l.bf16 %v4581_v14 }
 0x31f   : > { %v5538_v26 = vadd.f32 %v7117_v54, %v3462_v20  ;;  %v5400_v53 = vpop.f32.mrb[38].mxu0  ;;  %v3620_v0 = vpack.c.bf16 %v3597_v6, %v3596_v11  ;;  %v4587_v2 = vunpack.c.h.bf16 %v4725_v57 }
 0x320   : > { %v3570_v56 = vadd.f32 %v5535_v10, %v7154_v34  ;;  %v5541_v37 = vadd.f32 %v7125_v3, %v5400_v53  ;;  %v3465_v1 = vpop.f32.mrb[39].mxu0 }
 0x321   : > { %v3568_v62 = vadd.f32 %v5538_v26, %v7154_v34  ;;  %v5544_v60 = vadd.f32 %v7119_v63, %v3465_v1  ;;  %5441 = vmatprep.mubr.bf16.mxu1 %v3620_v0  ;;  %v4727_v1 = vld [vmem:[%s6005_s20 + $0x18] sm:$0xff]  }
 0x322   : > { %v3571_v5 = vadd.f32 %v5541_v37, %v7154_v34  ;;  %5442 = vmatmul.mubr.bf16.gmra.mrb[164].mxu1 %v3621_v24  ;;  %v3602_v61 = vmax.f32 %v3570_v56, 0.0  ;;  %v4583_v24 = vunpack.c.h.bf16 %v4581_v14  ;;  %v4731_v14 = vld [vmem:[%s6005_s20 + $0x38] sm:$0xff]  }
 0x323   : > { %v3569_v38 = vadd.f32 %v5544_v60, %v7154_v34  ;;  %v3600_v54 = vmax.f32 %v3568_v62, 0.0  ;;  %v4726_v60 = vld [vmem:[%s6005_s20 + $0x10] sm:$0xff]  }
 0x324   : > { %v3603_v52 = vmax.f32 %v3571_v5, 0.0 }
 0x325   : > { %v3601_v23 = vmax.f32 %v3569_v38, 0.0  ;;  %v5403_v50 = vpop.f32.mrb[40].mxu0 }
 0x326   : > { %v5547_v55 = vadd.f32 %v7135_v4, %v5403_v50  ;;  %v3478_v18 = vpop.f32.mrb[41].mxu0  ;;  %v3623_v3 = vpack.c.bf16 %v3603_v52, %v3602_v61  ;;  %v4594_v52 = vunpack.c.l.bf16 %v4727_v1 }
 0x327   : > { %v5550_v35 = vadd.f32 %v7129_v19, %v3478_v18  ;;  %v5404_v30 = vpop.f32.mrb[42].mxu0  ;;  %v3622_v47 = vpack.c.bf16 %v3601_v23, %v3600_v54 }
 0x328   : > { %v3574_v63 = vadd.f32 %v5547_v55, %v7154_v34  ;;  %v5553_v36 = vadd.f32 %v7137_v12, %v5404_v30  ;;  %v3481_v16 = vpop.f32.mrb[43].mxu0  ;;  %v4590_v55 = vunpack.c.l.bf16 %v4726_v60  ;;  %v4595_v30 = vunpack.c.h.bf16 %v4727_v1 }
 0x329   : > { %v3572_v9 = vadd.f32 %v5550_v35, %v7154_v34  ;;  %v5556_v46 = vadd.f32 %v7131_v49, %v3481_v16  ;;  %5445 = vmatprep.mubr.bf16.mxu1 %v3622_v47  ;;  %v4591_v16 = vunpack.c.h.bf16 %v4726_v60 }
 0x32a   : > { %v3575_v27 = vadd.f32 %v5553_v36, %v7154_v34  ;;  %5446 = vmatmul.mubr.bf16.gmra.mrb[168].mxu1 %v3623_v3  ;;  %v3606_v58 = vmax.f32 %v3574_v63, 0.0 }
 0x32b   : > { %v3573_v4 = vadd.f32 %v5556_v46, %v7154_v34  ;;  %v3604_v19 = vmax.f32 %v3572_v9, 0.0 }
 0x32c   : > { %v3607_v25 = vmax.f32 %v3575_v27, 0.0 }
 0x32d   : > { %v3605_v39 = vmax.f32 %v3573_v4, 0.0  ;;  %v5407_v28 = vpop.f32.mrb[44].mxu0 }
 0x32e   : > { %v5559_v13 = vadd.f32 %v7147_v15, %v5407_v28  ;;  %v3494_v45 = vpop.f32.mrb[45].mxu0  ;;  %v3625_v12 = vpack.c.bf16 %v3607_v25, %v3606_v58  ;;  %v4729_v25 = vld [vmem:[%s6005_s20 + $0x28] sm:$0xff]  }
 0x32f   : > { %v5562_v40 = vadd.f32 %v7141_v51, %v3494_v45  ;;  %v5408_v21 = vpop.f32.mrb[46].mxu0  ;;  %v3624_v8 = vpack.c.bf16 %v3605_v39, %v3604_v19  ;;  %v4728_v39 = vld [vmem:[%s6005_s20 + $0x20] sm:$0xff]  }
 0x330   : > { %v3578_v49 = vadd.f32 %v5559_v13, %v7154_v34  ;;  %v5565_v17 = vadd.f32 %v7149_v31, %v5408_v21  ;;  %v3497_v44 = vpop.f32.mrb[47].mxu0 }
 0x331   : > { %v3576_v32 = vadd.f32 %v5562_v40, %v7154_v34  ;;  %v5568_v29 = vadd.f32 %v7143_v7, %v3497_v44  ;;  %5449 = vmatprep.mubr.bf16.mxu1 %v3624_v8  ;;  %v7225_v7 = vld [vmem:[%s7359_s8] ss:$0 sm:$0xff] }
 0x332   : > { %v3579_v15 = vadd.f32 %v5565_v17, %v7154_v34  ;;  %5450 = vmatmul.mubr.bf16.gmra.mrb[172].mxu1 %v3625_v12  ;;  %v3610_v51 = vmax.f32 %v3578_v49, 0.0  ;;  %v4602_v12 = vunpack.c.l.bf16 %v4729_v25  ;;  %v4598_v49 = vunpack.c.l.bf16 %v4728_v39 }
 0x333   : > { %v3577_v48 = vadd.f32 %v5568_v29, %v7154_v34  ;;  %v3608_v22 = vmax.f32 %v3576_v32, 0.0  ;;  %v4603_v29 = vunpack.c.h.bf16 %v4729_v25 }
 0x334   : > { %v3611_v42 = vmax.f32 %v3579_v15, 0.0 }
 0x335   : > { %v3609_v59 = vmax.f32 %v3577_v48, 0.0 }
 0x336   : > { %v3627_v41 = vpack.c.bf16 %v3611_v42, %v3610_v51  ;;  %v4599_v42 = vunpack.c.h.bf16 %v4728_v39 }
 0x337   : > { %v3626_v31 = vpack.c.bf16 %v3609_v59, %v3608_v22 }
 0x339   : > { %5453 = vmatprep.mubr.bf16.mxu1 %v3626_v31 }
 0x33a   : > { %5454 = vmatmul.mubr.bf16.gmra.mrb[176].mxu1 %v3627_v41 }
 0x3d5   : > { %v5427_v34 = vpop.f32.mrb[148].mxu1 }
 0x3d6   : > { %v3806_v11 = vadd.f32 %v5427_v34, %v7225_v7  ;;  %v3797_v6 = vpop.f32.mrb[149].mxu1  ;;  %v4730_v34 = vld [vmem:[%s6005_s20 + $0x30] sm:$0xff]  }
 0x3d7   : > { %v3798_v10 = vadd.f32 %v7225_v7, %v3797_v6  ;;  %v5428_v20 = vpop.f32.mrb[150].mxu1 }
 0x3d8   : > { %v3926_v26 = vadd.f32 %v4586_v43, %v3806_v11  ;;  %v3809_v53 = vadd.f32 %v5428_v20, %v7225_v7  ;;  %v3800_v0 = vpop.f32.mrb[151].mxu1 }
 0x3d9   : > { %v3924_v56 = vadd.f32 %v4582_v33, %v3798_v10  ;;  %v3801_v37 = vadd.f32 %v7225_v7, %v3800_v0 }
 0x3da   : > { %v3927_v62 = vadd.f32 %v4587_v2, %v3809_v53  ;;  %v3958_v38 = vmax.f32 %v3926_v26, 0.0  ;;  %v4610_v2 = vunpack.c.l.bf16 %v4731_v14  ;;  %v4606_v26 = vunpack.c.l.bf16 %v4730_v34 }
 0x3db   : > { %v3925_v5 = vadd.f32 %v4583_v24, %v3801_v37  ;;  %v3956_v54 = vmax.f32 %v3924_v56, 0.0  ;;  %v4611_v37 = vunpack.c.h.bf16 %v4731_v14 }
 0x3dc   : > { %v3959_v61 = vmax.f32 %v3927_v62, 0.0 }
 0x3dd   : > { %v3957_v23 = vmax.f32 %v3925_v5, 0.0  ;;  %v5431_v50 = vpop.f32.mrb[152].mxu1  ;;  %v4607_v5 = vunpack.c.h.bf16 %v4730_v34 }
 0x3de   : > { %v4652_v18 = vpack.c.bf16 %v3959_v61, %v3958_v38  ;;  %v3822_v3 = vadd.f32 %v5431_v50, %v7225_v7  ;;  %v3813_v35 = vpop.f32.mrb[153].mxu1  ;;  %v4733_v50 = vld [vmem:[%s6005_s20 + $0x48] sm:$0xff]  }
 0x3df   : > { %v4647_v47 = vpack.c.bf16 %v3957_v23, %v3956_v54  ;;  %v3814_v63 = vadd.f32 %v7225_v7, %v3813_v35  ;;  %v5432_v36 = vpop.f32.mrb[154].mxu1 }
 0x3e0   : > { %4740 = vst [vmem:[%s7238_s29 + $0x8] sm:$0xff] %v4652_v18   ;;  %v3930_v9 = vadd.f32 %v4594_v52, %v3822_v3  ;;  %v3825_v46 = vadd.f32 %v5432_v36, %v7225_v7  ;;  %v3816_v27 = vpop.f32.mrb[155].mxu1  ;;  %v4732_v18 = vld [vmem:[%s6005_s20 + $0x40] sm:$0xff]  }
 0x3e1   : > { %4648 = vst [vmem:[%s7238_s29] sm:$0xff] %v4647_v47   ;;  %v3928_v4 = vadd.f32 %v4590_v55, %v3814_v63  ;;  %v3817_v58 = vadd.f32 %v7225_v7, %v3816_v27  ;;  %v4618_v47 = vunpack.c.l.bf16 %v4733_v50 }
 0x3e2   : > { %v3931_v19 = vadd.f32 %v4595_v30, %v3825_v46  ;;  %v3962_v13 = vmax.f32 %v3930_v9, 0.0  ;;  %v4614_v9 = vunpack.c.l.bf16 %v4732_v18 }
 0x3e3   : > { %v3929_v28 = vadd.f32 %v4591_v16, %v3817_v58  ;;  %v3960_v40 = vmax.f32 %v3928_v4, 0.0  ;;  %v4619_v58 = vunpack.c.h.bf16 %v4733_v50 }
 0x3e4   : > { %v3963_v45 = vmax.f32 %v3931_v19, 0.0 }
 0x3e5   : > { %v3961_v21 = vmax.f32 %v3929_v28, 0.0  ;;  %v5435_v8 = vpop.f32.mrb[156].mxu1  ;;  %v4615_v28 = vunpack.c.h.bf16 %v4732_v18 }
 0x3e6   : > { %v4662_v17 = vpack.c.bf16 %v3963_v45, %v3962_v13  ;;  %v3838_v44 = vadd.f32 %v5435_v8, %v7225_v7  ;;  %v3829_v32 = vpop.f32.mrb[157].mxu1  ;;  %v4735_v8 = vld [vmem:[%s6005_s20 + $0x58] sm:$0xff]  }
 0x3e7   : > { %v4657_v15 = vpack.c.bf16 %v3961_v21, %v3960_v40  ;;  %v3830_v48 = vadd.f32 %v7225_v7, %v3829_v32  ;;  %v5436_v51 = vpop.f32.mrb[158].mxu1 }
 0x3e8   : > { %4742 = vst [vmem:[%s7238_s29 + $0x18] sm:$0xff] %v4662_v17   ;;  %v3934_v22 = vadd.f32 %v4602_v12, %v3838_v44  ;;  %v3841_v59 = vadd.f32 %v5436_v51, %v7225_v7  ;;  %v3832_v41 = vpop.f32.mrb[159].mxu1  ;;  %v4734_v17 = vld [vmem:[%s6005_s20 + $0x50] sm:$0xff]  }
 0x3e9   : > { %4741 = vst [vmem:[%s7238_s29 + $0x10] sm:$0xff] %v4657_v15   ;;  %v3932_v31 = vadd.f32 %v4598_v49, %v3830_v48  ;;  %v3833_v57 = vadd.f32 %v7225_v7, %v3832_v41  ;;  %v4626_v15 = vunpack.c.l.bf16 %v4735_v8 }
 0x3ea   : > { %v3935_v43 = vadd.f32 %v4603_v29, %v3841_v59  ;;  %v3966_v11 = vmax.f32 %v3934_v22, 0.0  ;;  %v4622_v22 = vunpack.c.l.bf16 %v4734_v17 }
 0x3eb   : > { %v3933_v33 = vadd.f32 %v4599_v42, %v3833_v57  ;;  %v3964_v10 = vmax.f32 %v3932_v31, 0.0  ;;  %v4627_v57 = vunpack.c.h.bf16 %v4735_v8 }
 0x3ec   : > { %v3967_v6 = vmax.f32 %v3935_v43, 0.0 }
 0x3ed   : > { %v3965_v20 = vmax.f32 %v3933_v33, 0.0  ;;  %v5439_v24 = vpop.f32.mrb[160].mxu1  ;;  %v4623_v33 = vunpack.c.h.bf16 %v4734_v17 }
 0x3ee   : > { %v4672_v53 = vpack.c.bf16 %v3967_v6, %v3966_v11  ;;  %v3854_v0 = vadd.f32 %v5439_v24, %v7225_v7  ;;  %v3845_v56 = vpop.f32.mrb[161].mxu1  ;;  %v4737_v24 = vld [vmem:[%s6005_s20 + $0x68] sm:$0xff]  }
 0x3ef   : > { %v4667_v1 = vpack.c.bf16 %v3965_v20, %v3964_v10  ;;  %v3846_v62 = vadd.f32 %v7225_v7, %v3845_v56  ;;  %v5440_v60 = vpop.f32.mrb[162].mxu1 }
 0x3f0   : > { %4744 = vst [vmem:[%s7238_s29 + $0x28] sm:$0xff] %v4672_v53   ;;  %v3938_v38 = vadd.f32 %v4610_v2, %v3854_v0  ;;  %v3857_v61 = vadd.f32 %v5440_v60, %v7225_v7  ;;  %v3848_v52 = vpop.f32.mrb[163].mxu1  ;;  %v4736_v53 = vld [vmem:[%s6005_s20 + $0x60] sm:$0xff]  }
 0x3f1   : > { %4743 = vst [vmem:[%s7238_s29 + $0x20] sm:$0xff] %v4667_v1   ;;  %v3936_v54 = vadd.f32 %v4606_v26, %v3846_v62  ;;  %v3849_v23 = vadd.f32 %v7225_v7, %v3848_v52  ;;  %v4634_v1 = vunpack.c.l.bf16 %v4737_v24 }
 0x3f2   : > { %v3939_v55 = vadd.f32 %v4611_v37, %v3857_v61  ;;  %v3970_v35 = vmax.f32 %v3938_v38, 0.0  ;;  %v4630_v38 = vunpack.c.l.bf16 %v4736_v53 }
 0x3f3   : > { %v3937_v3 = vadd.f32 %v4607_v5, %v3849_v23  ;;  %v3968_v63 = vmax.f32 %v3936_v54, 0.0  ;;  %v4635_v23 = vunpack.c.h.bf16 %v4737_v24 }
 0x3f4   : > { %v3971_v30 = vmax.f32 %v3939_v55, 0.0 }
 0x3f5   : > { %v3969_v36 = vmax.f32 %v3937_v3, 0.0  ;;  %v5443_v16 = vpop.f32.mrb[164].mxu1  ;;  %v4631_v3 = vunpack.c.h.bf16 %v4736_v53 }
 0x3f6   : > { %v4682_v46 = vpack.c.bf16 %v3971_v30, %v3970_v35  ;;  %v3870_v27 = vadd.f32 %v5443_v16, %v7225_v7  ;;  %v3861_v4 = vpop.f32.mrb[165].mxu1  ;;  %v4739_v16 = vld [vmem:[%s6005_s20 + $0x78] sm:$0xff]  }
 0x3f7   : > { %v4677_v25 = vpack.c.bf16 %v3969_v36, %v3968_v63  ;;  %v3862_v19 = vadd.f32 %v7225_v7, %v3861_v4  ;;  %v5444_v39 = vpop.f32.mrb[166].mxu1 }
 0x3f8   : > { %4746 = vst [vmem:[%s7238_s29 + $0x38] sm:$0xff] %v4682_v46   ;;  %v3942_v13 = vadd.f32 %v4618_v47, %v3870_v27  ;;  %v3873_v45 = vadd.f32 %v5444_v39, %v7225_v7  ;;  %v3864_v12 = vpop.f32.mrb[167].mxu1  ;;  %v4738_v46 = vld [vmem:[%s6005_s20 + $0x70] sm:$0xff]   ;;  %s4579_s20 = sshll.u32 %s5868_s12, 11  ;;  %s7305_s12 = scalar_lea.sflag [#allocation4], %s540_s27 }
 0x3f9   : > { %4745 = vst [vmem:[%s7238_s29 + $0x30] sm:$0xff] %v4677_v25   ;;  %v3940_v40 = vadd.f32 %v4614_v9, %v3862_v19  ;;  %v3865_v21 = vadd.f32 %v7225_v7, %v3864_v12  ;;  %v4642_v25 = vunpack.c.l.bf16 %v4739_v16  ;;  %s7297_s25 = scalar_lea.hbm %s7360_s9, %s4579_s20 }
 0x3fa   : > { %v3943_v49 = vadd.f32 %v4619_v58, %v3873_v45  ;;  %v3974_v32 = vmax.f32 %v3942_v13, 0.0  ;;  %v4638_v13 = vunpack.c.l.bf16 %v4738_v46 }
 0x3fb   : > { %v3941_v44 = vadd.f32 %v4615_v28, %v3865_v21  ;;  %v3972_v48 = vmax.f32 %v3940_v40, 0.0  ;;  %v4643_v21 = vunpack.c.h.bf16 %v4739_v16 }
 0x3fc   : > { %v3975_v29 = vmax.f32 %v3943_v49, 0.0 }
 0x3fd   : > { %v3973_v51 = vmax.f32 %v3941_v44, 0.0  ;;  %v5447_v42 = vpop.f32.mrb[168].mxu1  ;;  %v4639_v44 = vunpack.c.h.bf16 %v4738_v46 }
 0x3fe   : > { %v4692_v59 = vpack.c.bf16 %v3975_v29, %v3974_v32  ;;  %v3886_v41 = vadd.f32 %v5447_v42, %v7225_v7  ;;  %v3877_v31 = vpop.f32.mrb[169].mxu1 }
 0x3ff   : > { %v4687_v14 = vpack.c.bf16 %v3973_v51, %v3972_v48  ;;  %v3878_v43 = vadd.f32 %v7225_v7, %v3877_v31  ;;  %v5448_v34 = vpop.f32.mrb[170].mxu1 }
 0x400   : > { %4748 = vst [vmem:[%s7238_s29 + $0x48] sm:$0xff] %v4692_v59   ;;  %v3946_v11 = vadd.f32 %v4626_v15, %v3886_v41  ;;  %v3889_v6 = vadd.f32 %v5448_v34, %v7225_v7  ;;  %v3880_v2 = vpop.f32.mrb[171].mxu1 }
 0x401   : > { %4747 = vst [vmem:[%s7238_s29 + $0x40] sm:$0xff] %v4687_v14   ;;  %v3944_v10 = vadd.f32 %v4622_v22, %v3878_v43  ;;  %v3881_v20 = vadd.f32 %v7225_v7, %v3880_v2 }
 0x402   : > { %v3947_v26 = vadd.f32 %v4627_v57, %v3889_v6  ;;  %v3978_v56 = vmax.f32 %v3946_v11, 0.0 }
 0x403   : > { %v3945_v0 = vadd.f32 %v4623_v33, %v3881_v20  ;;  %v3976_v62 = vmax.f32 %v3944_v10, 0.0 }
 0x404   : > { %v3979_v37 = vmax.f32 %v3947_v26, 0.0 }
 0x405   : > { %v3977_v60 = vmax.f32 %v3945_v0, 0.0  ;;  %v5451_v5 = vpop.f32.mrb[172].mxu1 }
 0x406   : > { %v4702_v61 = vpack.c.bf16 %v3979_v37, %v3978_v56  ;;  %v3902_v52 = vadd.f32 %v5451_v5, %v7225_v7  ;;  %v3893_v54 = vpop.f32.mrb[173].mxu1 }
 0x407   : > { %v4697_v50 = vpack.c.bf16 %v3977_v60, %v3976_v62  ;;  %v3894_v55 = vadd.f32 %v7225_v7, %v3893_v54  ;;  %v5452_v18 = vpop.f32.mrb[174].mxu1 }
 0x408   : > { %4750 = vst [vmem:[%s7238_s29 + $0x58] sm:$0xff] %v4702_v61   ;;  %v3950_v35 = vadd.f32 %v4634_v1, %v3902_v52  ;;  %v3905_v30 = vadd.f32 %v5452_v18, %v7225_v7  ;;  %v3896_v47 = vpop.f32.mrb[175].mxu1 }
 0x409   : > { %4749 = vst [vmem:[%s7238_s29 + $0x50] sm:$0xff] %v4697_v50   ;;  %v3948_v63 = vadd.f32 %v4630_v38, %v3894_v55  ;;  %v3897_v36 = vadd.f32 %v7225_v7, %v3896_v47 }
 0x40a   : > { %v3951_v9 = vadd.f32 %v4635_v23, %v3905_v30  ;;  %v3982_v4 = vmax.f32 %v3950_v35, 0.0 }
 0x40b   : > { %v3949_v27 = vadd.f32 %v4631_v3, %v3897_v36  ;;  %v3980_v19 = vmax.f32 %v3948_v63, 0.0 }
 0x40c   : > { %v3983_v58 = vmax.f32 %v3951_v9, 0.0 }
 0x40d   : > { %v3981_v39 = vmax.f32 %v3949_v27, 0.0  ;;  %v5455_v28 = vpop.f32.mrb[176].mxu1 }
 0x40e   : > { %v4712_v45 = vpack.c.bf16 %v3983_v58, %v3982_v4  ;;  %v3918_v12 = vadd.f32 %v5455_v28, %v7225_v7  ;;  %v3909_v40 = vpop.f32.mrb[177].mxu1 }
 0x40f   : > { %v4707_v8 = vpack.c.bf16 %v3981_v39, %v3980_v19  ;;  %v3910_v49 = vadd.f32 %v7225_v7, %v3909_v40  ;;  %v5456_v17 = vpop.f32.mrb[178].mxu1 }
 0x410   : > { %4752 = vst [vmem:[%s7238_s29 + $0x68] sm:$0xff] %v4712_v45   ;;  %v3954_v32 = vadd.f32 %v4642_v25, %v3918_v12  ;;  %v3921_v29 = vadd.f32 %v5456_v17, %v7225_v7  ;;  %v3912_v15 = vpop.f32.mrb[179].mxu1 }
 0x411   : > { %4751 = vst [vmem:[%s7238_s29 + $0x60] sm:$0xff] %v4707_v8   ;;  %v3952_v48 = vadd.f32 %v4638_v13, %v3910_v49  ;;  %v3913_v51 = vadd.f32 %v7225_v7, %v3912_v15 }
 0x412   : > { %v3955_v42 = vadd.f32 %v4643_v21, %v3921_v29  ;;  %v3986_v59 = vmax.f32 %v3954_v32, 0.0 }
 0x413   : > { %v3953_v22 = vadd.f32 %v4639_v44, %v3913_v51  ;;  %v3984_v31 = vmax.f32 %v3952_v48, 0.0 }
 0x414   : > { %v3987_v41 = vmax.f32 %v3955_v42, 0.0 }
 0x415   : > { %v3985_v57 = vmax.f32 %v3953_v22, 0.0 }
 0x416   : > { %v4722_v14 = vpack.c.bf16 %v3987_v41, %v3986_v59 }
 0x417   : > { %v4717_v7 = vpack.c.bf16 %v3985_v57, %v3984_v31 }
 0x418   : > { %4754 = vst [vmem:[%s7238_s29 + $0x78] sm:$0xff] %v4722_v14  }
 0x419   : > { %4753 = vst [vmem:[%s7238_s29 + $0x70] sm:$0xff] %v4717_v7  }
 0x41a   : > { %5811 = shalt.err (!%p5808_p5)
}
 0x41b   : > { %s5812_s26 = scalar_lea.hbm %s7297_s25, 2048  ;;  %s5816_s29 = scalar_lea.hbm %s7360_s9, 4096 }
 0x41c   : > { %p5813_p6 = scmp.ne.s32.totalorder %s7297_s25, %s5812_s26  ;;  %p5817_p10 = scmp.lt.u32.totalorder %s7297_s25, %s7360_s9 }
 0x41d   : > { %p5818_p11 = scmp.lt.u32.totalorder %s5816_s29, %s5812_s26  ;;  %p5820_p13 = scmp.lt.u32.totalorder %s5812_s26, %s7297_s25 }
 0x41e   : > { %p5814_p7 = pnand %p5813_p6, %p5973_p4 }
 0x41f   : > { %p5819_p12 = por %p5818_p11, %p5817_p10 }
 0x420   : > { %p5815_p9 = pneg %p5814_p7 }
 0x421   : > { %p5821_p0 = por %p5820_p13, %p5819_p12 }
 0x423   : > { %p5822_p1 = pnand %p5821_p0, %p5815_p9 }
 0x425   : > { %5825 = shalt.err (!%p5822_p1)
}
 0x426   : > { %s5881_s23 = smov 64   ;;  %s5882_s24 = smov 4  }
 0x427   : > { %5633 = dma.vmem_to_hbm [thread:$0]  (%p5973_p4), %s7299_s16, 2048, %s7297_s25, %s7305_s12, %s5881_s23, %s5881_s23, %s5882_s24  }
 0x428 PF: > { %p5639_p2 = scmp.ge.s32.totalorder %s5876_s14, 2  ;;  %s4180_s0 = sand.u32 1, %s5856_s30  }
 0x429   : > { %s4181_s3 = scalar_lea.sflag [#allocation4], %s4180_s0 }
 0x42a   : > { %p5636_p3 = pnand %p5639_p2, %p5980_p8 }
 0x42c   : > { %5851 = dma.done.wait (!%p5636_p3), %s4181_s3, 2048  }
 0x42d   : > { %5853 = vsyncadd (!%p5636_p3), %s4181_s3, 4294965248  ;;  %s22_s14 = sadd.s32 1, %s5876_s14   ;;  %s7412_s30 = smov %s5860_s10 }
 0x42e   : > { %p19_p5 = scmp.ge.s32.totalorder %s22_s14, 4   ;;  %s7413_s10 = smov %s5864_s11 }
 0x42f   : > { %s7414_s11 = smov %s5986_s22  ;;  %s7415_s12 = smov %s5872_s13 }
 0x430   : > { %s7416_s13 = smov %s7418_s17  ;;  %21 = sbr.rel (!%p19_p5) target bundleno = 7 (0x7), region = 102 }
 0x437   :  { %4186 = vsyncpa [#allocation4], 1 }
 0x438   :  { %4188 = vsyncpa [#allocation4 + $0x1], 1 }

</bundles_post_ra>
